<compile_context>
chip_gen: v6e
topology: v6e:2x2x1
jax: 0.10.0
libtpu: 0.0.40
codegen_flags: <defaults>
</compile_context>

<pallas_src>
import functools
import math

import jax
import jax.numpy as jnp
from jax.experimental import pallas as pl
from jax.experimental.pallas import tpu as pltpu


# ---------------------------------------------------------------------------
# Fused kernel: grid = (B // Bt, L). One grid step = one encoder layer for one
# batch tile of Bt elements. Activations carried layer-to-layer in VMEM scratch.
# ---------------------------------------------------------------------------
def _encoder_stack_kernel(x_ref, mask_ref,
                          wqkv_ref, bqkv_ref, wo_ref, bo_ref,
                          ln1_g_ref, ln1_b_ref,
                          w1_ref, b1_ref, w2_ref, b2_ref,
                          ln2_g_ref, ln2_b_ref,
                          o_ref,
                          x_carry, qkv_scr, attn_scr,
                          *, embed_dim, num_heads, num_layers, batch_tile,
                          seq_len, compute_dtype):
    E = embed_dim
    H = num_heads
    Dh = E // H
    Bt = batch_tile
    S = seq_len
    R = Bt * S                                  # rows fed to every MXU matmul
    eps = 1e-5
    scale = 1.0 / math.sqrt(Dh)
    layer = pl.program_id(1)

    # Layer 0: load this batch tile's activations into the VMEM carry.
    @pl.when(layer == 0)
    def _():
        x_carry[...] = x_ref[...].reshape(R, E).astype(jnp.float32)

    x = x_carry[...]                            # (R, E) f32
    mask = mask_ref[...]                        # (S, S) additive float mask

    # ---- QKV projection (weights pre-transposed: x @ W directly) ----
    # Staged in VMEM (full-lane-width store) so per-head slices are cheap ref loads
    # and live ranges stay bounded across the head loop.
    qkv_scr[...] = (jnp.dot(x.astype(compute_dtype), wqkv_ref[0],
                            preferred_element_type=jnp.float32)
                    + bqkv_ref[0])              # (R, 3E) f32

    # ---- Multi-head attention with the output projection fused per head ----
    attn_scr[...] = jnp.broadcast_to(bo_ref[0].astype(jnp.float32), (R, E))
    for h in range(H):                          # only one head's tiles live at a time
        lo = h * Dh
        qh = (qkv_scr[:, lo:lo + Dh] * scale).astype(compute_dtype).reshape(Bt, S, Dh)
        kh = qkv_scr[:, E + lo:E + lo + Dh].astype(compute_dtype).reshape(Bt, S, Dh)
        vh = qkv_scr[:, 2 * E + lo:2 * E + lo + Dh].astype(compute_dtype).reshape(Bt, S, Dh)

        s = jnp.einsum("bqd,bkd->bqk", qh, kh,
                       preferred_element_type=jnp.float32) + mask        # (Bt, S, S) f32
        s = s - jnp.max(s, axis=-1, keepdims=True)
        p = jnp.exp(s)
        # NOTE: approx=True uses the EUP reciprocal (off the VALU path); flip to
        # approx=False if bit-level parity with PyTorch softmax is required.
        p = p * pl.reciprocal(jnp.sum(p, axis=-1, keepdims=True), approx=True)

        ah = jnp.einsum("bqk,bkd->bqd", p.astype(compute_dtype), vh,
                        preferred_element_type=jnp.float32)              # (Bt, S, Dh)
        # Fused W_O slice: lane-dense (N = E) matmul accumulated full-width (no Dh-wide
        # masked stores, no f32 scratch round trip of the concatenated heads).
        attn_scr[...] += jnp.dot(ah.reshape(R, Dh).astype(compute_dtype),
                                 wo_ref[0, lo:lo + Dh, :],
                                 preferred_element_type=jnp.float32)

    attn = attn_scr[...]                        # (R, E) f32, bias already included

    # ---- LayerNorm 1 (f32 statistics) ----
    mu = jnp.mean(attn, axis=-1, keepdims=True)
    var = jnp.mean(jnp.square(attn - mu), axis=-1, keepdims=True)
    x1 = (attn - mu) * jax.lax.rsqrt(var + eps) * ln1_g_ref[0] + ln1_b_ref[0]

    # ---- Feed forward: Linear(E,4E) -> ReLU -> Linear(4E,E) ----
    hdn = jnp.dot(x1.astype(compute_dtype), w1_ref[0],
                  preferred_element_type=jnp.float32) + b1_ref[0]
    hdn = jnp.maximum(hdn, 0.0)
    y = jnp.dot(hdn.astype(compute_dtype), w2_ref[0],
                preferred_element_type=jnp.float32) + b2_ref[0]

    # ---- LayerNorm 2 (f32 statistics) ----
    mu2 = jnp.mean(y, axis=-1, keepdims=True)
    var2 = jnp.mean(jnp.square(y - mu2), axis=-1, keepdims=True)
    out = (y - mu2) * jax.lax.rsqrt(var2 + eps) * ln2_g_ref[0] + ln2_b_ref[0]

    # carry to next layer (skip the wasted store on the last layer)
    @pl.when(layer < num_layers - 1)
    def _():
        x_carry[...] = out

    @pl.when(layer == num_layers - 1)
    def _():
        o_ref[...] = out.reshape(Bt, S, E).astype(o_ref.dtype)


# ---------------------------------------------------------------------------
# Host-side sizing helpers
# ---------------------------------------------------------------------------
def _round_up(n, m):
    return (n + m - 1) // m * m


def _pick_batch_tile(B, Sp, E, requested=None):
    """Largest divisor of B that keeps >=2 parallel grid blocks (v7x: 2 TensorCores)
    and keeps the per-step activation VMEM footprint within a conservative budget, so
    most of VMEM stays available for the double-buffered layer weights."""
    if requested is not None:
        assert B % requested == 0, "batch_tile must divide the batch size"
        return requested
    per_elem = Sp * E * 4 * (1 + 3 + 1 + 4)     # carry + qkv + attn scratch + dbl-buffered I/O
    max_bt = max(1, (16 << 20) // per_elem)
    target = min(max(1, B // 2), max_bt)
    bt = 1
    for d in range(1, B + 1):
        if B % d == 0 and d <= target:
            bt = d
    return bt


def _vmem_limit_bytes(E, Sp, Bt, io_itemsize, wbytes=2):
    """Scoped-VMEM limit computed from the actual block sizes (not a hard-coded 32 MiB)."""
    weights = 12 * E * E * wbytes + 16 * E * 4           # matmul weights (bf16) + biases/LN (f32)
    scratch = Bt * Sp * (E + 3 * E + E) * 4              # carry + qkv staging + attn accumulator
    io_blocks = 2 * 2 * Bt * Sp * E * io_itemsize        # double-buffered x and out blocks
    mask_b = 2 * Sp * Sp * 4
    need = 2 * weights + scratch + io_blocks + mask_b    # weights double-buffered by the pipeline
    need = int(need * 1.3) + (8 << 20)                   # headroom for FFN temporaries / spills
    return max(32 << 20, min(need, 100 << 20))           # stays <= 64 MiB unless blocks demand more


# ---------------------------------------------------------------------------
# Wrapper: single pallas_call for the whole layer stack
# ---------------------------------------------------------------------------
def vit_encoder(x, mask, packed, *, embed_dim, num_heads, batch_tile=None,
                compute_dtype=jnp.bfloat16):
    B, S, E = x.shape
    assert E == embed_dim and E % num_heads == 0
    L = packed["wqkv_t"].shape[0]

    # ---- pad the sequence axis to a sublane multiple (8); mask out padded keys ----
    Sp = _round_up(S, 8)
    mask = mask.astype(jnp.float32)
    if Sp != S:
        x = jnp.pad(x, ((0, 0), (0, Sp - S), (0, 0)))
        mask_p = jnp.full((Sp, Sp), jnp.float32(-1e9), jnp.float32)
        mask = mask_p.at[:S, :S].set(mask)      # padded key columns get -1e9

    Bt = _pick_batch_tile(B, Sp, E, batch_tile)
    grid = (B // Bt, L)

    def wspec(shape):
        # per-layer parameter block, streamed along the (arbitrary) layer axis
        return pl.BlockSpec((1,) + shape,
                            lambda b, l, _s=len(shape): (l,) + (0,) * _s)

    in_specs = [
        pl.BlockSpec((Bt, Sp, E), lambda b, l: (b, 0, 0)),   # x (batch tile, layer-invariant)
        pl.BlockSpec((Sp, Sp), lambda b, l: (0, 0)),         # mask (grid-invariant)
        wspec((E, 3 * E)), wspec((1, 3 * E)),                # in_proj W^T / b
        wspec((E, E)), wspec((1, E)),                        # out_proj W^T / b
        wspec((1, E)), wspec((1, E)),                        # norm1 gamma / beta
        wspec((E, 4 * E)), wspec((1, 4 * E)),                # ff linear1 W^T / b
        wspec((4 * E, E)), wspec((1, E)),                    # ff linear2 W^T / b
        wspec((1, E)), wspec((1, E)),                        # norm2 gamma / beta
    ]

    kernel = functools.partial(
        _encoder_stack_kernel, embed_dim=E, num_heads=num_heads,
        num_layers=L, batch_tile=Bt, seq_len=Sp, compute_dtype=compute_dtype)

    # advisory cost hint for the XLA scheduler
    wbytes = jnp.dtype(compute_dtype).itemsize
    flops = 2 * B * L * (12 * Sp * E * E + 2 * Sp * Sp * E)
    transcendentals = B * L * num_heads * Sp * Sp
    bytes_accessed = ((B // Bt) * L * (12 * E * E * wbytes + 16 * E * 4)
                      + 2 * B * Sp * E * x.dtype.itemsize + Sp * Sp * 4)
    cost = pl.CostEstimate(flops=int(flops),
                           transcendentals=int(transcendentals),
                           bytes_accessed=int(bytes_accessed))

    out = pl.pallas_call(
        kernel,
        out_shape=jax.ShapeDtypeStruct((B, Sp, E), x.dtype),
        grid=grid,
        in_specs=in_specs,
        out_specs=pl.BlockSpec((Bt, Sp, E), lambda b, l: (b, 0, 0)),
        scratch_shapes=[pltpu.VMEM((Bt * Sp, E), jnp.float32),       # activation carry
                        pltpu.VMEM((Bt * Sp, 3 * E), jnp.float32),   # qkv staging
                        pltpu.VMEM((Bt * Sp, E), jnp.float32)],      # attn + W_O accumulator
        compiler_params=pltpu.CompilerParams(
            dimension_semantics=("parallel", "arbitrary"),
            vmem_limit_bytes=_vmem_limit_bytes(E, Sp, Bt, x.dtype.itemsize, wbytes)),
        cost_estimate=cost,
    )(x, mask,
      packed["wqkv_t"], packed["bqkv"], packed["wo_t"], packed["bo"],
      packed["ln1_g"], packed["ln1_b"],
      packed["w1_t"], packed["b1"], packed["w2_t"], packed["b2"],
      packed["ln2_g"], packed["ln2_b"])

    return out[:, :S, :] if Sp != S else out


# ---------------------------------------------------------------------------
# Parameter construction (PyTorch layouts) and host-side packing
# ---------------------------------------------------------------------------
def make_layer_params(key, embed_dim):
    """Parameters in PyTorch layout (as nn.MultiheadAttention / nn.Linear store them)."""
    E = embed_dim
    ks = jax.random.split(key, 6)
    scl = 0.05
    return {
        "in_proj_weight":  scl * jax.random.normal(ks[0], (3 * E, E), jnp.float32),
        "in_proj_bias":    scl * jax.random.normal(ks[1], (3 * E,), jnp.float32),
        "out_proj_weight": scl * jax.random.normal(ks[2], (E, E), jnp.float32),
        "out_proj_bias":   scl * jax.random.normal(ks[3], (E,), jnp.float32),
        "ln1_g": jnp.ones((E,), jnp.float32),
        "ln1_b": jnp.zeros((E,), jnp.float32),
        "w1": scl * jax.random.normal(ks[4], (4 * E, E), jnp.float32),
        "b1": jnp.zeros((4 * E,), jnp.float32),
        "w2": scl * jax.random.normal(ks[5], (E, 4 * E), jnp.float32),
        "b2": jnp.zeros((E,), jnp.float32),
        "ln2_g": jnp.ones((E,), jnp.float32),
        "ln2_b": jnp.zeros((E,), jnp.float32),
    }


def pack_params(layer_params, compute_dtype=jnp.bfloat16):
    """Stack per-layer params into (L, ...) arrays, pre-transpose matmul weights so the
    kernel computes `x @ W` directly, and pre-cast matmul weights to bf16.
    Biases / LayerNorm params stay f32 (they are added after the f32 accumulate)."""
    # TODO(synk): int8 (v5e/v6e) / fp8 (v7x) weight streaming with per-layer scales
    # would halve weight HBM traffic further; not implemented here.
    st = lambda name: jnp.stack([p[name] for p in layer_params])
    row = lambda name: st(name)[:, None, :]                 # (L, 1, D)
    tr = lambda name: jnp.swapaxes(st(name), 1, 2).astype(compute_dtype)
    return {
        "wqkv_t": tr("in_proj_weight"),   # (L, E, 3E)
        "bqkv":   row("in_proj_bias"),    # (L, 1, 3E)
        "wo_t":   tr("out_proj_weight"),  # (L, E, E)
        "bo":     row("out_proj_bias"),
        "ln1_g":  row("ln1_g"), "ln1_b": row("ln1_b"),
        "w1_t":   tr("w1"),               # (L, E, 4E)
        "b1":     row("b1"),
        "w2_t":   tr("w2"),               # (L, 4E, E)
        "b2":     row("b2"),
        "ln2_g":  row("ln2_g"), "ln2_b": row("ln2_b"),
    }


if __name__ == "__main__":
    # small shapes consistent with the module
    B, S, E, H, L = 4, 8, 32, 4, 2   # batch, seq, embed_dim, num_heads, num_layers
    # dropout = 0.0 (eval mode -> identity)
    # TODO(synk): training-mode dropout not implemented (inference kernel).

    key = jax.random.PRNGKey(0)
    kx, kp = jax.random.split(key, 2)

    x = jax.random.normal(kx, (B, S, E), jnp.float32)          # layout: (B, S, E)
    # additive float attn_mask (S, S): 0 where allowed, -1e9 where masked
    mask = jnp.where(jnp.tril(jnp.ones((S, S), jnp.bool_)), 0.0, -1e9).astype(jnp.float32)

    layer_params = [make_layer_params(k, E) for k in jax.random.split(kp, L)]
    packed = pack_params(layer_params)

    out = vit_encoder(x, mask, packed, embed_dim=E, num_heads=H)
    out = jax.block_until_ready(out)
    assert out.shape == (B, S, E) and bool(jnp.all(jnp.isfinite(out)))
    print("KERNEL_OK")
</pallas_src>

<mosaic_0001>
module attributes {stable_mosaic.version = 11 : i64} {
  func.func @_encoder_stack_kernel(%arg0: i32, %arg1: i32, %arg2: memref<2x8x32xf32, #tpu.memory_space<vmem>>, %arg3: memref<8x8xf32, #tpu.memory_space<vmem>>, %arg4: memref<1x32x96xbf16, #tpu.memory_space<vmem>>, %arg5: memref<1x1x96xf32, #tpu.memory_space<vmem>>, %arg6: memref<1x32x32xbf16, #tpu.memory_space<vmem>>, %arg7: memref<1x1x32xf32, #tpu.memory_space<vmem>>, %arg8: memref<1x1x32xf32, #tpu.memory_space<vmem>>, %arg9: memref<1x1x32xf32, #tpu.memory_space<vmem>>, %arg10: memref<1x32x128xbf16, #tpu.memory_space<vmem>>, %arg11: memref<1x1x128xf32, #tpu.memory_space<vmem>>, %arg12: memref<1x128x32xbf16, #tpu.memory_space<vmem>>, %arg13: memref<1x1x32xf32, #tpu.memory_space<vmem>>, %arg14: memref<1x1x32xf32, #tpu.memory_space<vmem>>, %arg15: memref<1x1x32xf32, #tpu.memory_space<vmem>>, %arg16: memref<2x8x32xf32, #tpu.memory_space<vmem>>, %arg17: memref<16x32xf32, #tpu.memory_space<vmem>>, %arg18: memref<16x96xf32, #tpu.memory_space<vmem>>, %arg19: memref<16x32xf32, #tpu.memory_space<vmem>>) attributes {dimension_semantics = [#tpu.dimension_semantics<parallel>, #tpu.dimension_semantics<arbitrary>], iteration_bounds = array<i64: 2, 2>, scalar_prefetch = 0 : i64, scratch_operands = 3 : i64, tpu.core_type = #tpu.core_type<tc>, window_params = [{transform_indices = @transform_0, window_bounds = array<i64: 2, 8, 32>}, {pipeline_mode = #tpu.pipeline_mode<synchronous>, transform_indices = @transform_1, window_bounds = array<i64: 8, 8>}, {transform_indices = @transform_2, window_bounds = array<i64: 1, 32, 96>}, {transform_indices = @transform_3, window_bounds = array<i64: 1, 1, 96>}, {transform_indices = @transform_4, window_bounds = array<i64: 1, 32, 32>}, {transform_indices = @transform_5, window_bounds = array<i64: 1, 1, 32>}, {transform_indices = @transform_6, window_bounds = array<i64: 1, 1, 32>}, {transform_indices = @transform_7, window_bounds = array<i64: 1, 1, 32>}, {transform_indices = @transform_8, window_bounds = array<i64: 1, 32, 128>}, {transform_indices = @transform_9, window_bounds = array<i64: 1, 1, 128>}, {transform_indices = @transform_10, window_bounds = array<i64: 1, 128, 32>}, {transform_indices = @transform_11, window_bounds = array<i64: 1, 1, 32>}, {transform_indices = @transform_12, window_bounds = array<i64: 1, 1, 32>}, {transform_indices = @transform_13, window_bounds = array<i64: 1, 1, 32>}, {transform_indices = @transform_14, window_bounds = array<i64: 2, 8, 32>}]} {
    %c0_i32 = arith.constant 0 : i32
    %0 = arith.cmpi eq, %arg1, %c0_i32 : i32
    %1 = arith.extui %0 : i1 to i32
    %c0_i32_0 = arith.constant 0 : i32
    %2 = arith.cmpi ne, %1, %c0_i32_0 : i32
    scf.if %2 {
      %c0_124 = arith.constant 0 : index
      %c0_125 = arith.constant 0 : index
      %c0_126 = arith.constant 0 : index
      %236 = vector.load %arg2[%c0_124, %c0_125, %c0_126] : memref<2x8x32xf32, #tpu.memory_space<vmem>>, vector<2x8x32xf32>
      %237 = vector.shape_cast %236 : vector<2x8x32xf32> to vector<16x32xf32>
      %c0_127 = arith.constant 0 : index
      %c0_128 = arith.constant 0 : index
      %238 = vector.load %arg17[%c0_127, %c0_128] : memref<16x32xf32, #tpu.memory_space<vmem>>, vector<16x32xf32>
      tpu.vector_store %arg17[%c0_127, %c0_128], %237 {strides = array<i32>} : memref<16x32xf32, #tpu.memory_space<vmem>>, vector<16x32xf32>,
    } else {
    }
    %c0 = arith.constant 0 : index
    %c0_1 = arith.constant 0 : index
    %3 = vector.load %arg17[%c0, %c0_1] : memref<16x32xf32, #tpu.memory_space<vmem>>, vector<16x32xf32>
    %c0_2 = arith.constant 0 : index
    %c0_3 = arith.constant 0 : index
    %4 = vector.load %arg3[%c0_2, %c0_3] : memref<8x8xf32, #tpu.memory_space<vmem>>, vector<8x8xf32>
    %5 = arith.truncf %3 : vector<16x32xf32> to vector<16x32xbf16>
    %c0_4 = arith.constant 0 : index
    %c0_5 = arith.constant 0 : index
    %c0_6 = arith.constant 0 : index
    %6 = vector.load %arg4[%c0_4, %c0_5, %c0_6] : memref<1x32x96xbf16, #tpu.memory_space<vmem>>, vector<1x32x96xbf16>
    %7 = vector.shape_cast %6 : vector<1x32x96xbf16> to vector<32x96xbf16>
    %cst = arith.constant dense<0.000000e+00> : vector<16x96xf32>
    %8 = tpu.matmul %5, %7, %cst {dimension_numbers = #tpu.dot_dimension_numbers<[1], [0], [0], [1], [0, 0, 1, 1], [], []>} : vector<16x32xbf16>, vector<32x96xbf16>, vector<16x96xf32> -> vector<16x96xf32>
    %c0_7 = arith.constant 0 : index
    %c0_8 = arith.constant 0 : index
    %c0_9 = arith.constant 0 : index
    %9 = vector.load %arg5[%c0_7, %c0_8, %c0_9] : memref<1x1x96xf32, #tpu.memory_space<vmem>>, vector<1x1x96xf32>
    %10 = vector.shape_cast %9 : vector<1x1x96xf32> to vector<1x96xf32>
    %11 = vector.broadcast %10 : vector<1x96xf32> to vector<16x96xf32>
    %12 = arith.addf %8, %11 : vector<16x96xf32>
    %c0_10 = arith.constant 0 : index
    %c0_11 = arith.constant 0 : index
    %13 = vector.load %arg18[%c0_10, %c0_11] : memref<16x96xf32, #tpu.memory_space<vmem>>, vector<16x96xf32>
    tpu.vector_store %arg18[%c0_10, %c0_11], %12 {strides = array<i32>} : memref<16x96xf32, #tpu.memory_space<vmem>>, vector<16x96xf32>,
    %c0_12 = arith.constant 0 : index
    %c0_13 = arith.constant 0 : index
    %c0_14 = arith.constant 0 : index
    %14 = vector.load %arg7[%c0_12, %c0_13, %c0_14] : memref<1x1x32xf32, #tpu.memory_space<vmem>>, vector<1x1x32xf32>
    %15 = vector.shape_cast %14 : vector<1x1x32xf32> to vector<1x32xf32>
    %16 = vector.shape_cast %15 : vector<1x32xf32> to vector<1x32xf32>
    %17 = vector.broadcast %16 : vector<1x32xf32> to vector<16x32xf32>
    %c0_15 = arith.constant 0 : index
    %c0_16 = arith.constant 0 : index
    %18 = vector.load %arg19[%c0_15, %c0_16] : memref<16x32xf32, #tpu.memory_space<vmem>>, vector<16x32xf32>
    tpu.vector_store %arg19[%c0_15, %c0_16], %17 {strides = array<i32>} : memref<16x32xf32, #tpu.memory_space<vmem>>, vector<16x32xf32>,
    %c0_17 = arith.constant 0 : index
    %c0_18 = arith.constant 0 : index
    %19 = vector.load %arg18[%c0_17, %c0_18] : memref<16x96xf32, #tpu.memory_space<vmem>>, vector<16x8xf32>
    %cst_19 = arith.constant 0.353553385 : f32
    %20 = vector.broadcast %cst_19 : f32 to vector<16x8xf32>
    %21 = arith.mulf %19, %20 : vector<16x8xf32>
    %22 = arith.truncf %21 : vector<16x8xf32> to vector<16x8xbf16>
    %23 = vector.shape_cast %22 : vector<16x8xbf16> to vector<2x8x8xbf16>
    %c0_20 = arith.constant 0 : index
    %c32 = arith.constant 32 : index
    %24 = vector.load %arg18[%c0_20, %c32] : memref<16x96xf32, #tpu.memory_space<vmem>>, vector<16x8xf32>
    %25 = arith.truncf %24 : vector<16x8xf32> to vector<16x8xbf16>
    %26 = vector.shape_cast %25 : vector<16x8xbf16> to vector<2x8x8xbf16>
    %c0_21 = arith.constant 0 : index
    %c64 = arith.constant 64 : index
    %27 = vector.load %arg18[%c0_21, %c64] : memref<16x96xf32, #tpu.memory_space<vmem>>, vector<16x8xf32>
    %28 = arith.truncf %27 : vector<16x8xf32> to vector<16x8xbf16>
    %29 = vector.shape_cast %28 : vector<16x8xbf16> to vector<2x8x8xbf16>
    "tpu.trace_start"() <{level = 10 : i32, message = "bqd,bkd->bqk"}> : () -> ()
    %cst_22 = arith.constant dense<0.000000e+00> : vector<2x8x8xf32>
    %30 = tpu.matmul %23, %26, %cst_22 {dimension_numbers = #tpu.dot_dimension_numbers<[2], [2], [1], [1], [0, 0, 0, 1, 1, 1], [0], [0]>} : vector<2x8x8xbf16>, vector<2x8x8xbf16>, vector<2x8x8xf32> -> vector<2x8x8xf32>
    "tpu.trace_stop"() : () -> ()
    %31 = vector.shape_cast %4 : vector<8x8xf32> to vector<1x8x8xf32>
    %32 = vector.broadcast %31 : vector<1x8x8xf32> to vector<2x8x8xf32>
    %33 = arith.addf %30, %32 : vector<2x8x8xf32>
    %cst_23 = arith.constant dense<0xFF800000> : vector<2x8xf32>
    %34 = vector.multi_reduction <maximumf>, %33, %cst_23 [2] : vector<2x8x8xf32> to vector<2x8xf32>
    %35 = vector.shape_cast %34 : vector<2x8xf32> to vector<2x8x1xf32>
    %36 = vector.broadcast %35 : vector<2x8x1xf32> to vector<2x8x8xf32>
    %37 = arith.subf %33, %36 : vector<2x8x8xf32>
    %38 = math.exp %37 : vector<2x8x8xf32>
    %cst_24 = arith.constant dense<0.000000e+00> : vector<2x8xf32>
    %39 = vector.multi_reduction <add>, %38, %cst_24 [2] : vector<2x8x8xf32> to vector<2x8xf32>
    %40 = vector.shape_cast %39 : vector<2x8xf32> to vector<2x8x1xf32>
    %41 = tpu.reciprocal %40 {approx = true} : vector<2x8x1xf32> -> vector<2x8x1xf32>
    %42 = vector.broadcast %41 : vector<2x8x1xf32> to vector<2x8x8xf32>
    %43 = arith.mulf %38, %42 : vector<2x8x8xf32>
    %44 = arith.truncf %43 : vector<2x8x8xf32> to vector<2x8x8xbf16>
    "tpu.trace_start"() <{level = 10 : i32, message = "bqk,bkd->bqd"}> : () -> ()
    %cst_25 = arith.constant dense<0.000000e+00> : vector<2x8x8xf32>
    %45 = tpu.matmul %44, %29, %cst_25 {dimension_numbers = #tpu.dot_dimension_numbers<[2], [1], [1], [2], [0, 0, 0, 1, 1, 2], [0], [0]>} : vector<2x8x8xbf16>, vector<2x8x8xbf16>, vector<2x8x8xf32> -> vector<2x8x8xf32>
    "tpu.trace_stop"() : () -> ()
    %c0_26 = arith.constant 0 : index
    %c0_27 = arith.constant 0 : index
    %46 = vector.load %arg19[%c0_26, %c0_27] : memref<16x32xf32, #tpu.memory_space<vmem>>, vector<16x32xf32>
    %47 = vector.shape_cast %45 : vector<2x8x8xf32> to vector<16x8xf32>
    %48 = arith.truncf %47 : vector<16x8xf32> to vector<16x8xbf16>
    %c0_28 = arith.constant 0 : index
    %c0_29 = arith.constant 0 : index
    %c0_30 = arith.constant 0 : index
    %49 = vector.load %arg6[%c0_28, %c0_29, %c0_30] : memref<1x32x32xbf16, #tpu.memory_space<vmem>>, vector<1x8x32xbf16>
    %50 = vector.shape_cast %49 : vector<1x8x32xbf16> to vector<8x32xbf16>
    %cst_31 = arith.constant dense<0.000000e+00> : vector<16x32xf32>
    %51 = tpu.matmul %48, %50, %cst_31 {dimension_numbers = #tpu.dot_dimension_numbers<[1], [0], [0], [1], [0, 0, 1, 1], [], []>} : vector<16x8xbf16>, vector<8x32xbf16>, vector<16x32xf32> -> vector<16x32xf32>
    %52 = arith.addf %46, %51 : vector<16x32xf32>
    %c0_32 = arith.constant 0 : index
    %c0_33 = arith.constant 0 : index
    %53 = vector.load %arg19[%c0_32, %c0_33] : memref<16x32xf32, #tpu.memory_space<vmem>>, vector<16x32xf32>
    tpu.vector_store %arg19[%c0_32, %c0_33], %52 {strides = array<i32>} : memref<16x32xf32, #tpu.memory_space<vmem>>, vector<16x32xf32>,
    %c0_34 = arith.constant 0 : index
    %c8 = arith.constant 8 : index
    %54 = vector.load %arg18[%c0_34, %c8] : memref<16x96xf32, #tpu.memory_space<vmem>>, vector<16x8xf32>
    %cst_35 = arith.constant 0.353553385 : f32
    %55 = vector.broadcast %cst_35 : f32 to vector<16x8xf32>
    %56 = arith.mulf %54, %55 : vector<16x8xf32>
    %57 = arith.truncf %56 : vector<16x8xf32> to vector<16x8xbf16>
    %58 = vector.shape_cast %57 : vector<16x8xbf16> to vector<2x8x8xbf16>
    %c0_36 = arith.constant 0 : index
    %c40 = arith.constant 40 : index
    %59 = vector.load %arg18[%c0_36, %c40] : memref<16x96xf32, #tpu.memory_space<vmem>>, vector<16x8xf32>
    %60 = arith.truncf %59 : vector<16x8xf32> to vector<16x8xbf16>
    %61 = vector.shape_cast %60 : vector<16x8xbf16> to vector<2x8x8xbf16>
    %c0_37 = arith.constant 0 : index
    %c72 = arith.constant 72 : index
    %62 = vector.load %arg18[%c0_37, %c72] : memref<16x96xf32, #tpu.memory_space<vmem>>, vector<16x8xf32>
    %63 = arith.truncf %62 : vector<16x8xf32> to vector<16x8xbf16>
    %64 = vector.shape_cast %63 : vector<16x8xbf16> to vector<2x8x8xbf16>
    "tpu.trace_start"() <{level = 10 : i32, message = "bqd,bkd->bqk"}> : () -> ()
    %cst_38 = arith.constant dense<0.000000e+00> : vector<2x8x8xf32>
    %65 = tpu.matmul %58, %61, %cst_38 {dimension_numbers = #tpu.dot_dimension_numbers<[2], [2], [1], [1], [0, 0, 0, 1, 1, 1], [0], [0]>} : vector<2x8x8xbf16>, vector<2x8x8xbf16>, vector<2x8x8xf32> -> vector<2x8x8xf32>
    "tpu.trace_stop"() : () -> ()
    %66 = vector.shape_cast %4 : vector<8x8xf32> to vector<1x8x8xf32>
    %67 = vector.broadcast %66 : vector<1x8x8xf32> to vector<2x8x8xf32>
    %68 = arith.addf %65, %67 : vector<2x8x8xf32>
    %cst_39 = arith.constant dense<0xFF800000> : vector<2x8xf32>
    %69 = vector.multi_reduction <maximumf>, %68, %cst_39 [2] : vector<2x8x8xf32> to vector<2x8xf32>
    %70 = vector.shape_cast %69 : vector<2x8xf32> to vector<2x8x1xf32>
    %71 = vector.broadcast %70 : vector<2x8x1xf32> to vector<2x8x8xf32>
    %72 = arith.subf %68, %71 : vector<2x8x8xf32>
    %73 = math.exp %72 : vector<2x8x8xf32>
    %cst_40 = arith.constant dense<0.000000e+00> : vector<2x8xf32>
    %74 = vector.multi_reduction <add>, %73, %cst_40 [2] : vector<2x8x8xf32> to vector<2x8xf32>
    %75 = vector.shape_cast %74 : vector<2x8xf32> to vector<2x8x1xf32>
    %76 = tpu.reciprocal %75 {approx = true} : vector<2x8x1xf32> -> vector<2x8x1xf32>
    %77 = vector.broadcast %76 : vector<2x8x1xf32> to vector<2x8x8xf32>
    %78 = arith.mulf %73, %77 : vector<2x8x8xf32>
    %79 = arith.truncf %78 : vector<2x8x8xf32> to vector<2x8x8xbf16>
    "tpu.trace_start"() <{level = 10 : i32, message = "bqk,bkd->bqd"}> : () -> ()
    %cst_41 = arith.constant dense<0.000000e+00> : vector<2x8x8xf32>
    %80 = tpu.matmul %79, %64, %cst_41 {dimension_numbers = #tpu.dot_dimension_numbers<[2], [1], [1], [2], [0, 0, 0, 1, 1, 2], [0], [0]>} : vector<2x8x8xbf16>, vector<2x8x8xbf16>, vector<2x8x8xf32> -> vector<2x8x8xf32>
    "tpu.trace_stop"() : () -> ()
    %c0_42 = arith.constant 0 : index
    %c0_43 = arith.constant 0 : index
    %81 = vector.load %arg19[%c0_42, %c0_43] : memref<16x32xf32, #tpu.memory_space<vmem>>, vector<16x32xf32>
    %82 = vector.shape_cast %80 : vector<2x8x8xf32> to vector<16x8xf32>
    %83 = arith.truncf %82 : vector<16x8xf32> to vector<16x8xbf16>
    %c0_44 = arith.constant 0 : index
    %c8_45 = arith.constant 8 : index
    %c0_46 = arith.constant 0 : index
    %84 = vector.load %arg6[%c0_44, %c8_45, %c0_46] : memref<1x32x32xbf16, #tpu.memory_space<vmem>>, vector<1x8x32xbf16>
    %85 = vector.shape_cast %84 : vector<1x8x32xbf16> to vector<8x32xbf16>
    %cst_47 = arith.constant dense<0.000000e+00> : vector<16x32xf32>
    %86 = tpu.matmul %83, %85, %cst_47 {dimension_numbers = #tpu.dot_dimension_numbers<[1], [0], [0], [1], [0, 0, 1, 1], [], []>} : vector<16x8xbf16>, vector<8x32xbf16>, vector<16x32xf32> -> vector<16x32xf32>
    %87 = arith.addf %81, %86 : vector<16x32xf32>
    %c0_48 = arith.constant 0 : index
    %c0_49 = arith.constant 0 : index
    %88 = vector.load %arg19[%c0_48, %c0_49] : memref<16x32xf32, #tpu.memory_space<vmem>>, vector<16x32xf32>
    tpu.vector_store %arg19[%c0_48, %c0_49], %87 {strides = array<i32>} : memref<16x32xf32, #tpu.memory_space<vmem>>, vector<16x32xf32>,
    %c0_50 = arith.constant 0 : index
    %c16 = arith.constant 16 : index
    %89 = vector.load %arg18[%c0_50, %c16] : memref<16x96xf32, #tpu.memory_space<vmem>>, vector<16x8xf32>
    %cst_51 = arith.constant 0.353553385 : f32
    %90 = vector.broadcast %cst_51 : f32 to vector<16x8xf32>
    %91 = arith.mulf %89, %90 : vector<16x8xf32>
    %92 = arith.truncf %91 : vector<16x8xf32> to vector<16x8xbf16>
    %93 = vector.shape_cast %92 : vector<16x8xbf16> to vector<2x8x8xbf16>
    %c0_52 = arith.constant 0 : index
    %c48 = arith.constant 48 : index
    %94 = vector.load %arg18[%c0_52, %c48] : memref<16x96xf32, #tpu.memory_space<vmem>>, vector<16x8xf32>
    %95 = arith.truncf %94 : vector<16x8xf32> to vector<16x8xbf16>
    %96 = vector.shape_cast %95 : vector<16x8xbf16> to vector<2x8x8xbf16>
    %c0_53 = arith.constant 0 : index
    %c80 = arith.constant 80 : index
    %97 = vector.load %arg18[%c0_53, %c80] : memref<16x96xf32, #tpu.memory_space<vmem>>, vector<16x8xf32>
    %98 = arith.truncf %97 : vector<16x8xf32> to vector<16x8xbf16>
    %99 = vector.shape_cast %98 : vector<16x8xbf16> to vector<2x8x8xbf16>
    "tpu.trace_start"() <{level = 10 : i32, message = "bqd,bkd->bqk"}> : () -> ()
    %cst_54 = arith.constant dense<0.000000e+00> : vector<2x8x8xf32>
    %100 = tpu.matmul %93, %96, %cst_54 {dimension_numbers = #tpu.dot_dimension_numbers<[2], [2], [1], [1], [0, 0, 0, 1, 1, 1], [0], [0]>} : vector<2x8x8xbf16>, vector<2x8x8xbf16>, vector<2x8x8xf32> -> vector<2x8x8xf32>
    "tpu.trace_stop"() : () -> ()
    %101 = vector.shape_cast %4 : vector<8x8xf32> to vector<1x8x8xf32>
    %102 = vector.broadcast %101 : vector<1x8x8xf32> to vector<2x8x8xf32>
    %103 = arith.addf %100, %102 : vector<2x8x8xf32>
    %cst_55 = arith.constant dense<0xFF800000> : vector<2x8xf32>
    %104 = vector.multi_reduction <maximumf>, %103, %cst_55 [2] : vector<2x8x8xf32> to vector<2x8xf32>
    %105 = vector.shape_cast %104 : vector<2x8xf32> to vector<2x8x1xf32>
    %106 = vector.broadcast %105 : vector<2x8x1xf32> to vector<2x8x8xf32>
    %107 = arith.subf %103, %106 : vector<2x8x8xf32>
    %108 = math.exp %107 : vector<2x8x8xf32>
    %cst_56 = arith.constant dense<0.000000e+00> : vector<2x8xf32>
    %109 = vector.multi_reduction <add>, %108, %cst_56 [2] : vector<2x8x8xf32> to vector<2x8xf32>
    %110 = vector.shape_cast %109 : vector<2x8xf32> to vector<2x8x1xf32>
    %111 = tpu.reciprocal %110 {approx = true} : vector<2x8x1xf32> -> vector<2x8x1xf32>
    %112 = vector.broadcast %111 : vector<2x8x1xf32> to vector<2x8x8xf32>
    %113 = arith.mulf %108, %112 : vector<2x8x8xf32>
    %114 = arith.truncf %113 : vector<2x8x8xf32> to vector<2x8x8xbf16>
    "tpu.trace_start"() <{level = 10 : i32, message = "bqk,bkd->bqd"}> : () -> ()
    %cst_57 = arith.constant dense<0.000000e+00> : vector<2x8x8xf32>
    %115 = tpu.matmul %114, %99, %cst_57 {dimension_numbers = #tpu.dot_dimension_numbers<[2], [1], [1], [2], [0, 0, 0, 1, 1, 2], [0], [0]>} : vector<2x8x8xbf16>, vector<2x8x8xbf16>, vector<2x8x8xf32> -> vector<2x8x8xf32>
    "tpu.trace_stop"() : () -> ()
    %c0_58 = arith.constant 0 : index
    %c0_59 = arith.constant 0 : index
    %116 = vector.load %arg19[%c0_58, %c0_59] : memref<16x32xf32, #tpu.memory_space<vmem>>, vector<16x32xf32>
    %117 = vector.shape_cast %115 : vector<2x8x8xf32> to vector<16x8xf32>
    %118 = arith.truncf %117 : vector<16x8xf32> to vector<16x8xbf16>
    %c0_60 = arith.constant 0 : index
    %c16_61 = arith.constant 16 : index
    %c0_62 = arith.constant 0 : index
    %119 = vector.load %arg6[%c0_60, %c16_61, %c0_62] : memref<1x32x32xbf16, #tpu.memory_space<vmem>>, vector<1x8x32xbf16>
    %120 = vector.shape_cast %119 : vector<1x8x32xbf16> to vector<8x32xbf16>
    %cst_63 = arith.constant dense<0.000000e+00> : vector<16x32xf32>
    %121 = tpu.matmul %118, %120, %cst_63 {dimension_numbers = #tpu.dot_dimension_numbers<[1], [0], [0], [1], [0, 0, 1, 1], [], []>} : vector<16x8xbf16>, vector<8x32xbf16>, vector<16x32xf32> -> vector<16x32xf32>
    %122 = arith.addf %116, %121 : vector<16x32xf32>
    %c0_64 = arith.constant 0 : index
    %c0_65 = arith.constant 0 : index
    %123 = vector.load %arg19[%c0_64, %c0_65] : memref<16x32xf32, #tpu.memory_space<vmem>>, vector<16x32xf32>
    tpu.vector_store %arg19[%c0_64, %c0_65], %122 {strides = array<i32>} : memref<16x32xf32, #tpu.memory_space<vmem>>, vector<16x32xf32>,
    %c0_66 = arith.constant 0 : index
    %c24 = arith.constant 24 : index
    %124 = vector.load %arg18[%c0_66, %c24] : memref<16x96xf32, #tpu.memory_space<vmem>>, vector<16x8xf32>
    %cst_67 = arith.constant 0.353553385 : f32
    %125 = vector.broadcast %cst_67 : f32 to vector<16x8xf32>
    %126 = arith.mulf %124, %125 : vector<16x8xf32>
    %127 = arith.truncf %126 : vector<16x8xf32> to vector<16x8xbf16>
    %128 = vector.shape_cast %127 : vector<16x8xbf16> to vector<2x8x8xbf16>
    %c0_68 = arith.constant 0 : index
    %c56 = arith.constant 56 : index
    %129 = vector.load %arg18[%c0_68, %c56] : memref<16x96xf32, #tpu.memory_space<vmem>>, vector<16x8xf32>
    %130 = arith.truncf %129 : vector<16x8xf32> to vector<16x8xbf16>
    %131 = vector.shape_cast %130 : vector<16x8xbf16> to vector<2x8x8xbf16>
    %c0_69 = arith.constant 0 : index
    %c88 = arith.constant 88 : index
    %132 = vector.load %arg18[%c0_69, %c88] : memref<16x96xf32, #tpu.memory_space<vmem>>, vector<16x8xf32>
    %133 = arith.truncf %132 : vector<16x8xf32> to vector<16x8xbf16>
    %134 = vector.shape_cast %133 : vector<16x8xbf16> to vector<2x8x8xbf16>
    "tpu.trace_start"() <{level = 10 : i32, message = "bqd,bkd->bqk"}> : () -> ()
    %cst_70 = arith.constant dense<0.000000e+00> : vector<2x8x8xf32>
    %135 = tpu.matmul %128, %131, %cst_70 {dimension_numbers = #tpu.dot_dimension_numbers<[2], [2], [1], [1], [0, 0, 0, 1, 1, 1], [0], [0]>} : vector<2x8x8xbf16>, vector<2x8x8xbf16>, vector<2x8x8xf32> -> vector<2x8x8xf32>
    "tpu.trace_stop"() : () -> ()
    %136 = vector.shape_cast %4 : vector<8x8xf32> to vector<1x8x8xf32>
    %137 = vector.broadcast %136 : vector<1x8x8xf32> to vector<2x8x8xf32>
    %138 = arith.addf %135, %137 : vector<2x8x8xf32>
    %cst_71 = arith.constant dense<0xFF800000> : vector<2x8xf32>
    %139 = vector.multi_reduction <maximumf>, %138, %cst_71 [2] : vector<2x8x8xf32> to vector<2x8xf32>
    %140 = vector.shape_cast %139 : vector<2x8xf32> to vector<2x8x1xf32>
    %141 = vector.broadcast %140 : vector<2x8x1xf32> to vector<2x8x8xf32>
    %142 = arith.subf %138, %141 : vector<2x8x8xf32>
    %143 = math.exp %142 : vector<2x8x8xf32>
    %cst_72 = arith.constant dense<0.000000e+00> : vector<2x8xf32>
    %144 = vector.multi_reduction <add>, %143, %cst_72 [2] : vector<2x8x8xf32> to vector<2x8xf32>
    %145 = vector.shape_cast %144 : vector<2x8xf32> to vector<2x8x1xf32>
    %146 = tpu.reciprocal %145 {approx = true} : vector<2x8x1xf32> -> vector<2x8x1xf32>
    %147 = vector.broadcast %146 : vector<2x8x1xf32> to vector<2x8x8xf32>
    %148 = arith.mulf %143, %147 : vector<2x8x8xf32>
    %149 = arith.truncf %148 : vector<2x8x8xf32> to vector<2x8x8xbf16>
    "tpu.trace_start"() <{level = 10 : i32, message = "bqk,bkd->bqd"}> : () -> ()
    %cst_73 = arith.constant dense<0.000000e+00> : vector<2x8x8xf32>
    %150 = tpu.matmul %149, %134, %cst_73 {dimension_numbers = #tpu.dot_dimension_numbers<[2], [1], [1], [2], [0, 0, 0, 1, 1, 2], [0], [0]>} : vector<2x8x8xbf16>, vector<2x8x8xbf16>, vector<2x8x8xf32> -> vector<2x8x8xf32>
    "tpu.trace_stop"() : () -> ()
    %c0_74 = arith.constant 0 : index
    %c0_75 = arith.constant 0 : index
    %151 = vector.load %arg19[%c0_74, %c0_75] : memref<16x32xf32, #tpu.memory_space<vmem>>, vector<16x32xf32>
    %152 = vector.shape_cast %150 : vector<2x8x8xf32> to vector<16x8xf32>
    %153 = arith.truncf %152 : vector<16x8xf32> to vector<16x8xbf16>
    %c0_76 = arith.constant 0 : index
    %c24_77 = arith.constant 24 : index
    %c0_78 = arith.constant 0 : index
    %154 = vector.load %arg6[%c0_76, %c24_77, %c0_78] : memref<1x32x32xbf16, #tpu.memory_space<vmem>>, vector<1x8x32xbf16>
    %155 = vector.shape_cast %154 : vector<1x8x32xbf16> to vector<8x32xbf16>
    %cst_79 = arith.constant dense<0.000000e+00> : vector<16x32xf32>
    %156 = tpu.matmul %153, %155, %cst_79 {dimension_numbers = #tpu.dot_dimension_numbers<[1], [0], [0], [1], [0, 0, 1, 1], [], []>} : vector<16x8xbf16>, vector<8x32xbf16>, vector<16x32xf32> -> vector<16x32xf32>
    %157 = arith.addf %151, %156 : vector<16x32xf32>
    %c0_80 = arith.constant 0 : index
    %c0_81 = arith.constant 0 : index
    %158 = vector.load %arg19[%c0_80, %c0_81] : memref<16x32xf32, #tpu.memory_space<vmem>>, vector<16x32xf32>
    tpu.vector_store %arg19[%c0_80, %c0_81], %157 {strides = array<i32>} : memref<16x32xf32, #tpu.memory_space<vmem>>, vector<16x32xf32>,
    %c0_82 = arith.constant 0 : index
    %c0_83 = arith.constant 0 : index
    %159 = vector.load %arg19[%c0_82, %c0_83] : memref<16x32xf32, #tpu.memory_space<vmem>>, vector<16x32xf32>
    %cst_84 = arith.constant dense<0.000000e+00> : vector<16xf32>
    %160 = vector.multi_reduction <add>, %159, %cst_84 [1] : vector<16x32xf32> to vector<16xf32>
    %161 = vector.shape_cast %160 : vector<16xf32> to vector<16x1xf32>
    %cst_85 = arith.constant 3.200000e+01 : f32
    %162 = vector.broadcast %cst_85 : f32 to vector<16x1xf32>
    %163 = arith.divf %161, %162 : vector<16x1xf32>
    %164 = vector.broadcast %163 : vector<16x1xf32> to vector<16x32xf32>
    %165 = arith.subf %159, %164 : vector<16x32xf32>
    %166 = arith.mulf %165, %165 : vector<16x32xf32>
    %cst_86 = arith.constant dense<0.000000e+00> : vector<16xf32>
    %167 = vector.multi_reduction <add>, %166, %cst_86 [1] : vector<16x32xf32> to vector<16xf32>
    %168 = vector.shape_cast %167 : vector<16xf32> to vector<16x1xf32>
    %cst_87 = arith.constant 3.200000e+01 : f32
    %169 = vector.broadcast %cst_87 : f32 to vector<16x1xf32>
    %170 = arith.divf %168, %169 : vector<16x1xf32>
    %171 = vector.broadcast %163 : vector<16x1xf32> to vector<16x32xf32>
    %172 = arith.subf %159, %171 : vector<16x32xf32>
    %cst_88 = arith.constant 9.99999974E-6 : f32
    %173 = vector.broadcast %cst_88 : f32 to vector<16x1xf32>
    %174 = arith.addf %170, %173 : vector<16x1xf32>
    %175 = math.rsqrt %174 : vector<16x1xf32>
    %176 = vector.broadcast %175 : vector<16x1xf32> to vector<16x32xf32>
    %177 = arith.mulf %172, %176 : vector<16x32xf32>
    %c0_89 = arith.constant 0 : index
    %c0_90 = arith.constant 0 : index
    %c0_91 = arith.constant 0 : index
    %178 = vector.load %arg8[%c0_89, %c0_90, %c0_91] : memref<1x1x32xf32, #tpu.memory_space<vmem>>, vector<1x1x32xf32>
    %179 = vector.shape_cast %178 : vector<1x1x32xf32> to vector<1x32xf32>
    %180 = vector.broadcast %179 : vector<1x32xf32> to vector<16x32xf32>
    %181 = arith.mulf %177, %180 : vector<16x32xf32>
    %c0_92 = arith.constant 0 : index
    %c0_93 = arith.constant 0 : index
    %c0_94 = arith.constant 0 : index
    %182 = vector.load %arg9[%c0_92, %c0_93, %c0_94] : memref<1x1x32xf32, #tpu.memory_space<vmem>>, vector<1x1x32xf32>
    %183 = vector.shape_cast %182 : vector<1x1x32xf32> to vector<1x32xf32>
    %184 = vector.broadcast %183 : vector<1x32xf32> to vector<16x32xf32>
    %185 = arith.addf %181, %184 : vector<16x32xf32>
    %186 = arith.truncf %185 : vector<16x32xf32> to vector<16x32xbf16>
    %c0_95 = arith.constant 0 : index
    %c0_96 = arith.constant 0 : index
    %c0_97 = arith.constant 0 : index
    %187 = vector.load %arg10[%c0_95, %c0_96, %c0_97] : memref<1x32x128xbf16, #tpu.memory_space<vmem>>, vector<1x32x128xbf16>
    %188 = vector.shape_cast %187 : vector<1x32x128xbf16> to vector<32x128xbf16>
    %cst_98 = arith.constant dense<0.000000e+00> : vector<16x128xf32>
    %189 = tpu.matmul %186, %188, %cst_98 {dimension_numbers = #tpu.dot_dimension_numbers<[1], [0], [0], [1], [0, 0, 1, 1], [], []>} : vector<16x32xbf16>, vector<32x128xbf16>, vector<16x128xf32> -> vector<16x128xf32>
    %c0_99 = arith.constant 0 : index
    %c0_100 = arith.constant 0 : index
    %c0_101 = arith.constant 0 : index
    %190 = vector.load %arg11[%c0_99, %c0_100, %c0_101] : memref<1x1x128xf32, #tpu.memory_space<vmem>>, vector<1x1x128xf32>
    %191 = vector.shape_cast %190 : vector<1x1x128xf32> to vector<1x128xf32>
    %192 = vector.broadcast %191 : vector<1x128xf32> to vector<16x128xf32>
    %193 = arith.addf %189, %192 : vector<16x128xf32>
    %cst_102 = arith.constant 0.000000e+00 : f32
    %194 = vector.broadcast %cst_102 : f32 to vector<16x128xf32>
    %195 = arith.maximumf %193, %194 : vector<16x128xf32>
    %196 = arith.truncf %195 : vector<16x128xf32> to vector<16x128xbf16>
    %c0_103 = arith.constant 0 : index
    %c0_104 = arith.constant 0 : index
    %c0_105 = arith.constant 0 : index
    %197 = vector.load %arg12[%c0_103, %c0_104, %c0_105] : memref<1x128x32xbf16, #tpu.memory_space<vmem>>, vector<1x128x32xbf16>
    %198 = vector.shape_cast %197 : vector<1x128x32xbf16> to vector<128x32xbf16>
    %cst_106 = arith.constant dense<0.000000e+00> : vector<16x32xf32>
    %199 = tpu.matmul %196, %198, %cst_106 {dimension_numbers = #tpu.dot_dimension_numbers<[1], [0], [0], [1], [0, 0, 1, 1], [], []>} : vector<16x128xbf16>, vector<128x32xbf16>, vector<16x32xf32> -> vector<16x32xf32>
    %c0_107 = arith.constant 0 : index
    %c0_108 = arith.constant 0 : index
    %c0_109 = arith.constant 0 : index
    %200 = vector.load %arg13[%c0_107, %c0_108, %c0_109] : memref<1x1x32xf32, #tpu.memory_space<vmem>>, vector<1x1x32xf32>
    %201 = vector.shape_cast %200 : vector<1x1x32xf32> to vector<1x32xf32>
    %202 = vector.broadcast %201 : vector<1x32xf32> to vector<16x32xf32>
    %203 = arith.addf %199, %202 : vector<16x32xf32>
    %cst_110 = arith.constant dense<0.000000e+00> : vector<16xf32>
    %204 = vector.multi_reduction <add>, %203, %cst_110 [1] : vector<16x32xf32> to vector<16xf32>
    %205 = vector.shape_cast %204 : vector<16xf32> to vector<16x1xf32>
    %cst_111 = arith.constant 3.200000e+01 : f32
    %206 = vector.broadcast %cst_111 : f32 to vector<16x1xf32>
    %207 = arith.divf %205, %206 : vector<16x1xf32>
    %208 = vector.broadcast %207 : vector<16x1xf32> to vector<16x32xf32>
    %209 = arith.subf %203, %208 : vector<16x32xf32>
    %210 = arith.mulf %209, %209 : vector<16x32xf32>
    %cst_112 = arith.constant dense<0.000000e+00> : vector<16xf32>
    %211 = vector.multi_reduction <add>, %210, %cst_112 [1] : vector<16x32xf32> to vector<16xf32>
    %212 = vector.shape_cast %211 : vector<16xf32> to vector<16x1xf32>
    %cst_113 = arith.constant 3.200000e+01 : f32
    %213 = vector.broadcast %cst_113 : f32 to vector<16x1xf32>
    %214 = arith.divf %212, %213 : vector<16x1xf32>
    %215 = vector.broadcast %207 : vector<16x1xf32> to vector<16x32xf32>
    %216 = arith.subf %203, %215 : vector<16x32xf32>
    %cst_114 = arith.constant 9.99999974E-6 : f32
    %217 = vector.broadcast %cst_114 : f32 to vector<16x1xf32>
    %218 = arith.addf %214, %217 : vector<16x1xf32>
    %219 = math.rsqrt %218 : vector<16x1xf32>
    %220 = vector.broadcast %219 : vector<16x1xf32> to vector<16x32xf32>
    %221 = arith.mulf %216, %220 : vector<16x32xf32>
    %c0_115 = arith.constant 0 : index
    %c0_116 = arith.constant 0 : index
    %c0_117 = arith.constant 0 : index
    %222 = vector.load %arg14[%c0_115, %c0_116, %c0_117] : memref<1x1x32xf32, #tpu.memory_space<vmem>>, vector<1x1x32xf32>
    %223 = vector.shape_cast %222 : vector<1x1x32xf32> to vector<1x32xf32>
    %224 = vector.broadcast %223 : vector<1x32xf32> to vector<16x32xf32>
    %225 = arith.mulf %221, %224 : vector<16x32xf32>
    %c0_118 = arith.constant 0 : index
    %c0_119 = arith.constant 0 : index
    %c0_120 = arith.constant 0 : index
    %226 = vector.load %arg15[%c0_118, %c0_119, %c0_120] : memref<1x1x32xf32, #tpu.memory_space<vmem>>, vector<1x1x32xf32>
    %227 = vector.shape_cast %226 : vector<1x1x32xf32> to vector<1x32xf32>
    %228 = vector.broadcast %227 : vector<1x32xf32> to vector<16x32xf32>
    %229 = arith.addf %225, %228 : vector<16x32xf32>
    %c1_i32 = arith.constant 1 : i32
    %230 = arith.cmpi slt, %arg1, %c1_i32 : i32
    %231 = arith.extui %230 : i1 to i32
    %c0_i32_121 = arith.constant 0 : i32
    %232 = arith.cmpi ne, %231, %c0_i32_121 : i32
    scf.if %232 {
      %c0_124 = arith.constant 0 : index
      %c0_125 = arith.constant 0 : index
      %236 = vector.load %arg17[%c0_124, %c0_125] : memref<16x32xf32, #tpu.memory_space<vmem>>, vector<16x32xf32>
      tpu.vector_store %arg17[%c0_124, %c0_125], %229 {strides = array<i32>} : memref<16x32xf32, #tpu.memory_space<vmem>>, vector<16x32xf32>,
    } else {
    }
    %c1_i32_122 = arith.constant 1 : i32
    %233 = arith.cmpi eq, %arg1, %c1_i32_122 : i32
    %234 = arith.extui %233 : i1 to i32
    %c0_i32_123 = arith.constant 0 : i32
    %235 = arith.cmpi ne, %234, %c0_i32_123 : i32
    scf.if %235 {
      %236 = vector.shape_cast %229 : vector<16x32xf32> to vector<2x8x32xf32>
      %c0_124 = arith.constant 0 : index
      %c0_125 = arith.constant 0 : index
      %c0_126 = arith.constant 0 : index
      %237 = vector.load %arg16[%c0_124, %c0_125, %c0_126] : memref<2x8x32xf32, #tpu.memory_space<vmem>>, vector<2x8x32xf32>
      tpu.vector_store %arg16[%c0_124, %c0_125, %c0_126], %236 {strides = array<i32>} : memref<2x8x32xf32, #tpu.memory_space<vmem>>, vector<2x8x32xf32>,
    } else {
    }
    return
  }
  func.func @transform_0(%arg0: i32, %arg1: i32) -> (i32, i32, i32) {
    %c0_i32 = arith.constant 0 : i32
    %c0_i32_0 = arith.constant 0 : i32
    %c0_i32_1 = arith.constant 0 : i32
    return %arg0, %c0_i32, %c0_i32_0 : i32, i32, i32
  }
  func.func @transform_1(%arg0: i32, %arg1: i32) -> (i32, i32) {
    %c0_i32 = arith.constant 0 : i32
    %c0_i32_0 = arith.constant 0 : i32
    %c0_i32_1 = arith.constant 0 : i32
    return %c0_i32, %c0_i32_0 : i32, i32
  }
  func.func @transform_2(%arg0: i32, %arg1: i32) -> (i32, i32, i32) {
    %c0_i32 = arith.constant 0 : i32
    %c0_i32_0 = arith.constant 0 : i32
    %c0_i32_1 = arith.constant 0 : i32
    return %arg1, %c0_i32, %c0_i32_0 : i32, i32, i32
  }
  func.func @transform_3(%arg0: i32, %arg1: i32) -> (i32, i32, i32) {
    %c0_i32 = arith.constant 0 : i32
    %c0_i32_0 = arith.constant 0 : i32
    %c0_i32_1 = arith.constant 0 : i32
    return %arg1, %c0_i32, %c0_i32_0 : i32, i32, i32
  }
  func.func @transform_4(%arg0: i32, %arg1: i32) -> (i32, i32, i32) {
    %c0_i32 = arith.constant 0 : i32
    %c0_i32_0 = arith.constant 0 : i32
    %c0_i32_1 = arith.constant 0 : i32
    return %arg1, %c0_i32, %c0_i32_0 : i32, i32, i32
  }
  func.func @transform_5(%arg0: i32, %arg1: i32) -> (i32, i32, i32) {
    %c0_i32 = arith.constant 0 : i32
    %c0_i32_0 = arith.constant 0 : i32
    %c0_i32_1 = arith.constant 0 : i32
    return %arg1, %c0_i32, %c0_i32_0 : i32, i32, i32
  }
  func.func @transform_6(%arg0: i32, %arg1: i32) -> (i32, i32, i32) {
    %c0_i32 = arith.constant 0 : i32
    %c0_i32_0 = arith.constant 0 : i32
    %c0_i32_1 = arith.constant 0 : i32
    return %arg1, %c0_i32, %c0_i32_0 : i32, i32, i32
  }
  func.func @transform_7(%arg0: i32, %arg1: i32) -> (i32, i32, i32) {
    %c0_i32 = arith.constant 0 : i32
    %c0_i32_0 = arith.constant 0 : i32
    %c0_i32_1 = arith.constant 0 : i32
    return %arg1, %c0_i32, %c0_i32_0 : i32, i32, i32
  }
  func.func @transform_8(%arg0: i32, %arg1: i32) -> (i32, i32, i32) {
    %c0_i32 = arith.constant 0 : i32
    %c0_i32_0 = arith.constant 0 : i32
    %c0_i32_1 = arith.constant 0 : i32
    return %arg1, %c0_i32, %c0_i32_0 : i32, i32, i32
  }
  func.func @transform_9(%arg0: i32, %arg1: i32) -> (i32, i32, i32) {
    %c0_i32 = arith.constant 0 : i32
    %c0_i32_0 = arith.constant 0 : i32
    %c0_i32_1 = arith.constant 0 : i32
    return %arg1, %c0_i32, %c0_i32_0 : i32, i32, i32
  }
  func.func @transform_10(%arg0: i32, %arg1: i32) -> (i32, i32, i32) {
    %c0_i32 = arith.constant 0 : i32
    %c0_i32_0 = arith.constant 0 : i32
    %c0_i32_1 = arith.constant 0 : i32
    return %arg1, %c0_i32, %c0_i32_0 : i32, i32, i32
  }
  func.func @transform_11(%arg0: i32, %arg1: i32) -> (i32, i32, i32) {
    %c0_i32 = arith.constant 0 : i32
    %c0_i32_0 = arith.constant 0 : i32
    %c0_i32_1 = arith.constant 0 : i32
    return %arg1, %c0_i32, %c0_i32_0 : i32, i32, i32
  }
  func.func @transform_12(%arg0: i32, %arg1: i32) -> (i32, i32, i32) {
    %c0_i32 = arith.constant 0 : i32
    %c0_i32_0 = arith.constant 0 : i32
    %c0_i32_1 = arith.constant 0 : i32
    return %arg1, %c0_i32, %c0_i32_0 : i32, i32, i32
  }
  func.func @transform_13(%arg0: i32, %arg1: i32) -> (i32, i32, i32) {
    %c0_i32 = arith.constant 0 : i32
    %c0_i32_0 = arith.constant 0 : i32
    %c0_i32_1 = arith.constant 0 : i32
    return %arg1, %c0_i32, %c0_i32_0 : i32, i32, i32
  }
  func.func @transform_14(%arg0: i32, %arg1: i32) -> (i32, i32, i32) {
    %c0_i32 = arith.constant 0 : i32
    %c0_i32_0 = arith.constant 0 : i32
    %c0_i32_1 = arith.constant 0 : i32
    return %arg0, %c0_i32, %c0_i32_0 : i32, i32, i32
  }
}

</mosaic_0001>

<bundles_post_ra>
// kernel: tpu_custom_call.1
= control target key start
LH: loop header
LB: loop body
LE: loop exit
PB: predicated region body
PF: predicated region fallthrough
CT: control target
= control target key end

     0   :  { %s3517_s0 = inlined_call_operand.vmem [shape: f32[4,8,32], index: 0, kind: input, shape index: {}]   ;;  %s3518_s1 = inlined_call_operand.vmem [shape: f32[8,8], index: 1, kind: input, shape index: {}]   ;;  %s3519_s2 = inlined_call_operand.vmem [shape: bf16[2,32,96], index: 2, kind: input, shape index: {}]   ;;  %s3520_s3 = inlined_call_operand.vmem [shape: f32[2,1,96], index: 3, kind: input, shape index: {}]   ;;  %s3521_s4 = inlined_call_operand.vmem [shape: bf16[2,32,32], index: 4, kind: input, shape index: {}]   ;;  %s3522_s5 = inlined_call_operand.vmem [shape: f32[2,1,32], index: 5, kind: input, shape index: {}]   ;;  %s3523_s6 = inlined_call_operand.vmem [shape: f32[2,1,32], index: 6, kind: input, shape index: {}]   ;;  %s3524_s7 = inlined_call_operand.vmem [shape: f32[2,1,32], index: 7, kind: input, shape index: {}]   ;;  %s3525_s8 = inlined_call_operand.vmem [shape: bf16[2,32,128], index: 8, kind: input, shape index: {}]   ;;  %s3526_s9 = inlined_call_operand.vmem [shape: f32[2,1,128], index: 9, kind: input, shape index: {}]   ;;  %s3527_s10 = inlined_call_operand.vmem [shape: bf16[2,128,32], index: 10, kind: input, shape index: {}]   ;;  %s3528_s11 = inlined_call_operand.vmem [shape: f32[2,1,32], index: 11, kind: input, shape index: {}]   ;;  %s3529_s12 = inlined_call_operand.vmem [shape: f32[2,1,32], index: 12, kind: input, shape index: {}]   ;;  %s3530_s13 = inlined_call_operand.vmem [shape: f32[2,1,32], index: 13, kind: input, shape index: {}]   ;;  %s3531_s14 = inlined_call_operand.hbm [shape: f32[4,8,32], index: 14, kind: output, shape index: {}]  }
   0x1   :  { %3547 = sst [smem:[#allocation21_spill]] %s3517_s0 }
   0x2   :  { %3548 = sst [smem:[#allocation22_spill]] %s3518_s1 }
   0x3   :  { %3549 = sst [smem:[#allocation23_spill]] %s3519_s2 }
   0x4   :  { %3550 = sst [smem:[#allocation24_spill]] %s3521_s4 }
   0x5   :  { %3551 = sst [smem:[#allocation25_spill]] %s3525_s8 }
   0x6   :  { %3552 = sst [smem:[#allocation26_spill]] %s3530_s13 }
   0x7   :  { %3553 = sst [smem:[#allocation27_spill]] %s3531_s14 }
   0x8   :  { %19 = vsyncpa [#allocation6], 0 }
   0x9   :  { %21 = vsyncpa [#allocation6 + $0x1], 0  ;;  %s3059_s29 = smov 0   ;;  %s3061_s30 = smov 0  }
   0xa   :  { %s3063_s15 = smov 0   ;;  %s3065_s16 = smov 0  }
   0xb   :  { %s3067_s17 = smov 0   ;;  %s3069_s18 = smov 0  }
   0xc   :  { %s3071_s19 = smov 0   ;;  %s3073_s20 = smov 0  }
   0xd LB: > { %3554 = sst [smem:[#allocation8_spill]] %s2938_s29  ;;  %s2422_s21 = sadd.s32 4294967295, %s2966_s20   ;;  %s2966_s20 = sphi %s3073_s20, %s27_s20   ;;  %s2962_s19 = sphi %s3071_s19, %s3598_s19   ;;  %s2958_s18 = sphi %s3069_s18, %s3597_s18   ;;  %s2954_s17 = sphi %s3067_s17, %s3596_s17   ;;  %s2950_s16 = sphi %s3065_s16, %s3595_s16   ;;  %s2946_s15 = sphi %s3063_s15, %s3594_s15   ;;  %s2942_s30 = sphi %s3061_s30, %s3593_s30   ;;  %s2938_s29 = sphi %s3059_s29, %s3592_s29  }
   0xe   : > { %3555 = sst [smem:[#allocation9_spill]] %s2942_s30  ;;  %s2423_s22 = sadd.s32 4294967294, %s2966_s20  }
   0xf   : > { %3556 = sst [smem:[#allocation10_spill]] %s2946_s15  ;;  %s36_s23 = sadd.s32 1, %s2958_s18 }
  0x10   : > { %3557 = sst [smem:[#allocation11_spill]] %s2950_s16  ;;  %p37_p0 = scmp.ge.s32.totalorder %s36_s23, 2 }
  0x11   : > { %3558 = sst [smem:[#allocation12_spill]] %s2954_s17  ;;  %s39_s24 = sadd.s32 1, %s2962_s19 }
  0x12   : > { %3559 = sst [smem:[#allocation13_spill]] %s2958_s18  ;;  %p415_p1 = scmp.ne.s32.totalorder %s2946_s15, %s2942_s30 }
  0x13   : > { %3560 = sst [smem:[#allocation14_spill]] %s2962_s19  ;;  %p416_p2 = scmp.eq.s32.totalorder %s2422_s21, 3 }
  0x14   : > { %3561 = sst [smem:[#allocation15_spill]] %s2966_s20  ;;  %s3600_s23 = smov (%p37_p0, %s36_s23), 0 }
  0x15   : > { %3562 = sst [smem:[#allocation16_spill]] %s3600_s23  ;;  %s3602_s24 = smov (!%p37_p0, %s39_s24), %s2962_s19 }
  0x16   : > { %p3108_p3 = por %p416_p2, %p415_p1  ;;  %p421_p4 = scmp.ne.s32.totalorder %s2942_s30, %s2938_s29 }
  0x17   : > { %p41_p5 = scmp.ge.s32.totalorder %s3602_s24, 2  ;;  %p422_p6 = scmp.eq.s32.totalorder %s2423_s22, 3 }
  0x18   : > { %s3563_s25 = scalar_select %p3108_p3, 1, 0 }
  0x19   : > { %p2426_p7 = scmp.ge.s32.totalorder %s2966_s20, 1  ;;  %p532_p8 = scmp.lt.s32.totalorder %s2966_s20, 5 }
  0x1a   : > { %3564 = sst [smem:[#allocation17_spill]] %s3563_s25  ;;  %s3604_s24 = smov (%p41_p5, %s3602_s24), 0 }
  0x1b   : > { %3565 = sst [smem:[#allocation18_spill]] %s3604_s24  ;;  %p3118_p9 = por %p422_p6, %p421_p4 }
  0x1c   : > { %p533_p10 = pnand %p2426_p7, %p532_p8  ;;  %s402_s27 = ssub.s32 %s2962_s19, %s3604_s24 }
  0x1d   : > { %s3566_s26 = scalar_select %p3118_p9, 1, 0 }
  0x1e   : > { %s405_s28 = sadd.s32 1, %s2946_s15  ;;  %p403_p11 = scmp.eq.s32.totalorder %s402_s27, 0 }
  0x1f   : > { %3567 = sst [smem:[#allocation19_spill]] %s3566_s26  ;;  %536 = sbr.rel (%p533_p10) target bundleno = 4512 (0x11a0), region = 76 }
  0x20   : > { %s3126_s21 = scalar_select %p403_p11, %s2946_s15, %s405_s28  }
  0x21   : > { %s3535_s22 = sand.u32 (!%p533_p10), 1, %s2942_s30   ;;  %s2428_s23 = sshll.u32 (!%p533_p10), %s2954_s17, 1 }
  0x22   : > { %3568 = sst [smem:[#allocation20_spill]] %s3126_s21  ;;  %s2427_s18 = sshll.u32 (!%p533_p10), %s3535_s22, 4 }
  0x23   : > { %p623_p12 = scmp.lt.s32.totalorder (!%p533_p10), %s2428_s23, 3  ;;  %p628_p13 = scmp.lt.s32.totalorder (!%p533_p10), %s2950_s16, 1 }
  0x24   : > { %s3569_s0 = sld [smem:[#allocation21_spill]]  ;;  %s3191_s30 = scalar_lea.vmem [#allocation5], %s2427_s18 }
  0x25   : > { %s3606_s23 = smov (!%p623_p12, %s2428_s23), 3  ;;  %s3570_s2 = sld [smem:[#allocation23_spill]] }
  0x26   : > { %s3134_s26 = scalar_select %p628_p13, %s2950_s16, 1 }
  0x27   : > { %s2429_s27 = sshll.u32 %s3606_s23, 3  ;;  %s3571_s4 = sld [smem:[#allocation24_spill]] }
  0x28   : > { %s2504_s19 = sshll.u32 %s3134_s26, 4  ;;  %s3572_s8 = sld [smem:[#allocation25_spill]] }
  0x29   : > { %s657_s25 = scalar_lea.vmem %s3526_s9, %s3134_s26  ;;  %s665_s13 = scalar_lea.vmem %s3528_s11, %s3134_s26 }
  0x2a   : > { %s626_s22 = scalar_lea.vmem %s3569_s0, %s2429_s27  ;;  %s3573_s21 = sld [smem:[#allocation26_spill]] }
  0x2b   : > { %s632_s29 = scalar_lea.vmem %s3570_s2, %s2504_s19  ;;  %s668_s2 = scalar_lea.vmem %s3529_s12, %s3134_s26 }
  0x2c   : > { %s3574_s17 = sld [smem:[#allocation11_spill]] }
  0x2d   : > { %s3150_s1 = scalar_lea.vmem %s3571_s4, %s2504_s19  ;;  %s2507_s4 = sshll.u32 %s3134_s26, 6 }
  0x2e   : > { %s3167_s20 = scalar_lea.vmem %s3572_s8, %s2504_s19  ;;  %s3181_s28 = scalar_lea.vmem %s3527_s10, %s2507_s4 }
  0x30   : > { %s671_s8 = scalar_lea.vmem %s3573_s21, %s3134_s26 }
  0x32   : > { %p2438_p0 = scmp.ne.s32.totalorder %s3574_s17, 0 }
  0x34   : > { %677 = sbr.rel (%p2438_p0) target bundleno = 59 (0x3b), region = 80 }
  0x39   : > { %v678_v0 = vld [vmem:[%s626_s22] sm:$0xff]  ;;  %vm680_vm0 = vcmask 261120   ;;  %v679_v1 = vld [vmem:[%s626_s22 + $0x8] sm:$0xff] }
  0x3a   : > { %681 = vst.msk [vmem:[#allocation2] sm:$0xff] %vm680_vm0, %v678_v0  ;;  %682 = vst.msk [vmem:[#allocation2 + $0x8] sm:$0xff] %vm680_vm0, %v679_v1 }
  0x3b PF: > { %v2822_v2 = vld [vmem:[%s632_s29 + $0x8] sm:$0xff]   ;;  %v2968_v3 = vmov 0.0   ;;  %v2823_v4 = vld [vmem:[%s632_s29] sm:$0xff]   ;;  %vm2969_vm1 = vmmov 0   ;;  %vm710_vm2 = vcmask 261120   ;;  %s3575_s18 = scalar_lea.vmem %s3520_s3, %s3134_s26  ;;  %vm755_vm3 = vcmask 785408   ;;  %s3577_s14 = scalar_lea.vmem %s3522_s5, %s3134_s26 }
  0x3c   : > { %2580 = vmatprep.subr.bf16.mxu1 %v2968_v3  ;;  %2606 = vmatprep.subr.bf16.mxu0 %v2968_v3  ;;  %v2439_v8 = vld [vmem:[%s3575_s18] ss:$0 sm:$0xff]  ;;  %s2970_s22 = smov 96   ;;  %vm784_vm4 = vcmask 64512   ;;  %s3576_s23 = sld [smem:[#allocation22_spill]]  ;;  %vm909_vm5 = vcmask 1043456  }
  0x3d   : > { %2581 = vmatpush3.bf16.msra.mxu1 %v2822_v2  ;;  %2584 = vmatprep.mubr.msk.bf16.mxu1 %vm2969_vm1, %v2968_v3  ;;  %s2971_s24 = smov 64   ;;  %s2972_s27 = smov 120   ;;  %v1004_v1 = vld [vmem:[%s3150_s1] sm:$0xf] }
  0x3e   : > { %2582 = vmatprep.subr.bf16.mxu1 %v2968_v3  ;;  %2608 = vmatprep.mubr.msk.bf16.mxu0 %vm2969_vm1, %v2968_v3  ;;  %s2973_s0 = smov 88   ;;  %v1009_v2 = vsel %vm909_vm5, %v1004_v1, 0  ;;  %s2974_s17 = smov 56  }
  0x3f   : > { %s2975_s4 = smov 112   ;;  %s2976_s29 = smov 80  }
  0x40   : > { %s2977_s18 = smov 48   ;;  %s2979_s21 = smov 104  }
  0x41   : > { %v683_v5 = vld [vmem:[#allocation2] sm:$0xff]  ;;  %v684_v6 = vld [vmem:[#allocation2 + $0x8] sm:$0xff]  ;;  %2583 = vmatpush3.bf16.msra.mxu1 %v2823_v4  ;;  %s2980_s16 = smov 40  }
  0x42   : > { %v686_v7 = vpack.c.bf16 %v684_v6, %v683_v5  ;;  %2588 = vmatprep.subr.bf16.mxu1 %v2968_v3  ;;  %v3235_v27 = vld [vmem:[%s3576_s23] sm:$0xff]  ;;  %s3578_s23 = scalar_lea.vmem %s3523_s6, %s3134_s26 }
  0x44   : > { %2585 = vmatmul.mubr.msk.bf16.vlgmr.msra.gmra.mxu1 %vm710_vm2, %v686_v7 }
  0x45   : > { %2590 = vmatprep.mubr.msk.bf16.mxu1 %vm2969_vm1, %v2968_v3 }
 0x104   : > { %v748_v9 = vpop.f32.mrf.mxu1 }
 0x105   : > { %v749_v10 = vadd.f32 %v2439_v8, %v748_v9 }
 0x106   : > { %v2586_v11 = vpop.f32.mrf.mxu1 }
 0x107   : > { %756 = vst.msk [vmem:[#allocation3] sm:$0xff] %vm755_vm3, %v749_v10 }
 0x108   : > { %v751_v12 = vpop.f32.mrf.mxu1 }
 0x109   : > { %v752_v13 = vadd.f32 %v2439_v8, %v751_v12 }
 0x10a   : > { %v2587_v14 = vpop.f32.mrf.mxu1 }
 0x10b   : > { %757 = vst.msk [vmem:[#allocation3 + $0x8] sm:$0xff] %vm755_vm3, %v752_v13 }
 0x10e   : > { %v767_v15 = vld [vmem:[#allocation3] sm:$0xff] }
 0x10f   : > { %v3210_v16 = vpack.c.bf16 %v767_v15, %v767_v15  ;;  %v769_v21 = vmul.f32 0.35355338, %v767_v15 }
 0x111   : > { %782 = vrot.lane.b32.xlu0 %v3210_v16, %s2970_s22  ;;  %v3218_v23 = vpack.c.bf16 %v769_v21, %v769_v21 }
 0x112   : > { %v768_v17 = vld [vmem:[#allocation3 + $0x8] sm:$0xff] }
 0x113   : > { %v3213_v18 = vpack.c.bf16 %v768_v17, %v768_v17  ;;  %v770_v25 = vmul.f32 0.35355338, %v768_v17 }
 0x115   : > { %832 = vrot.lane.b32.xlu0 %v3213_v18, %s2970_s22  ;;  %v3226_v26 = vpack.c.bf16 %v770_v25, %v770_v25  ;;  %v2443_v25 = vld [vmem:[%s3577_s14] ss:$0 sm:$0xff]  ;;  %s2978_s22 = smov 72  }
 0x116   : > { %765 = vst.msk [vmem:[#allocation4] sm:$0xff] %vm710_vm2, %v2443_v25  ;;  %766 = vst.msk [vmem:[#allocation4 + $0x8] sm:$0xff] %vm710_vm2, %v2443_v25 }
 0x183   : > { %v783_v19 = vpop.permute.xlu0 %782 }
 0x184   : > { %v789_v20 = vsel %vm784_vm4, %v783_v19, 0 }
 0x185   : > { %2589 = vmatpush3.bf16.xpose.msra.mxu1 %v789_v20 }
 0x186   : > { %2594 = vmatprep.subr.bf16.mxu1 %v2968_v3 }
 0x187   : > { %v833_v22 = vpop.permute.xlu0 %832 }
 0x188   : > { %v838_v24 = vsel %vm784_vm4, %v833_v22, 0 }
 0x18c   : > { %2591 = vmatmul.mubr.msk.bf16.vlgmr.msra.gmra.mxu1 %vm784_vm4, %v3218_v23 }
 0x18d   : > { %2595 = vmatpush3.bf16.xpose.msra.mxu1 %v838_v24  ;;  %2596 = vmatprep.mubr.msk.bf16.mxu1 %vm2969_vm1, %v2968_v3 }
 0x18e   : > { %2600 = vmatprep.subr.bf16.mxu1 %v2968_v3 }
 0x194   : > { %2597 = vmatmul.mubr.msk.bf16.vlgmr.msra.gmra.mxu1 %vm784_vm4, %v3226_v26 }
 0x195   : > { %2602 = vmatprep.mubr.msk.bf16.mxu1 %vm2969_vm1, %v2968_v3 }
 0x24c   : > { %v825_v28 = vpop.f32.mrf.mxu1 }
 0x24d   : > { %v826_v29 = vadd.f32 %v825_v28, %v3235_v27 }
 0x24e   : > { %v2592_v30 = vpop.f32.mrf.mxu1 }
 0x24f   : > { %v880_v31 = vsel %vm784_vm4, %v826_v29, -inf }
 0x250   : > { %881 = vmax.xlane.f32.xlu1 %v880_v31  ;;  %v828_v32 = vpop.f32.mrf.mxu1 }
 0x252   : > { %v2593_v33 = vpop.f32.mrf.mxu1 }
 0x253   : > { %v1001_v33 = vld [vmem:[#allocation4] sm:$0xff] }
 0x254   : > { %v874_v34 = vpop.f32.mrf.mxu1 }
 0x255   : > { %v875_v35 = vadd.f32 %v874_v34, %v3235_v27 }
 0x256   : > { %v2598_v36 = vpop.f32.mrf.mxu1 }
 0x257   : > { %v883_v37 = vsel %vm784_vm4, %v875_v35, -inf }
 0x258   : > { %884 = vmax.xlane.f32.xlu1 %v883_v37  ;;  %v877_v38 = vpop.f32.mrf.mxu1  ;;  %v1002_v37 = vld [vmem:[#allocation4 + $0x8] sm:$0xff] }
 0x25a   : > { %v2599_v39 = vpop.f32.mrf.mxu1 }
 0x269   : > { %904 = vrot.lane.b32.xlu1 %v3210_v16, %s2971_s24 }
 0x2d9   : > { %v882_v40 = vpop.xlane.xlu1 %881 }
 0x2da   : > { %v886_v41 = vsub.f32 %v826_v29, %v882_v40 }
 0x2dc   : > { %v888_v42 = vmul.f32 1.442695, %v886_v41 }
 0x2de   : > { %2834 = vpow2.f32 %v888_v42 }
 0x2e1   : > { %v885_v43 = vpop.xlane.xlu1 %884 }
 0x2e2   : > { %v887_v44 = vsub.f32 %v875_v35, %v885_v43 }
 0x2e4   : > { %v890_v45 = vmul.f32 1.442695, %v887_v44 }
 0x2e5   : > { %v905_v46 = vpop.permute.xlu1 %904 }
 0x2e6   : > { %2836 = vpow2.f32 %v890_v45  ;;  %v911_v47 = vsel %vm909_vm5, %v905_v46, 0 }
 0x2e7   : > { %2601 = vmatpush3.bf16.msra.mxu1 %v911_v47 }
 0x2e8   : > { %2612 = vmatprep.subr.bf16.mxu1 %v2968_v3 }
 0x2eb   : > { %v2835_v48 = vpop.eup %2834 }
 0x2ec   : > { %v892_v49 = vsel %vm784_vm4, %v2835_v48, 0.0 }
 0x2ed   : > { %893 = vadd.xlane.f32.xlu0 %v892_v49 }
 0x2f3   : > { %v2837_v50 = vpop.eup %2836 }
 0x2f4   : > { %v895_v51 = vsel %vm784_vm4, %v2837_v50, 0.0 }
 0x2f5   : > { %896 = vadd.xlane.f32.xlu1 %v895_v51 }
 0x303   : > { %1069 = vrot.lane.b32.xlu0 %v3218_v23, %s2972_s27 }
 0x306   : > { %953 = vrot.lane.b32.xlu1 %v3213_v18, %s2971_s24 }
 0x30a   : > { %1072 = vrot.lane.b32.xlu1 %v3210_v16, %s2973_s0 }
 0x30e   : > { %1124 = vrot.lane.b32.xlu1 %v3213_v18, %s2973_s0  ;;  %s3579_s0 = scalar_lea.vmem %s3524_s7, %s3134_s26 }
 0x312   : > { %1121 = vrot.lane.b32.xlu1 %v3226_v26, %s2972_s27 }
 0x376   : > { %v894_v52 = vpop.xlane.xlu0 %893 }
 0x377   : > { %2838 = vrcp.f32 %v894_v52 }
 0x37a   : > { %v1070_v0 = vpop.permute.xlu0 %1069 }
 0x37e   : > { %v897_v53 = vpop.xlane.xlu1 %896 }
 0x37f   : > { %2840 = vrcp.f32 %v897_v53 }
 0x382   : > { %v954_v54 = vpop.permute.xlu1 %953 }
 0x383   : > { %v959_v55 = vsel %vm909_vm5, %v954_v54, 0 }
 0x384   : > { %v2839_v56 = vpop.eup %2838  ;;  %2607 = vmatpush3.bf16.msra.mxu0 %v959_v55 }
 0x385   : > { %v900_v57 = vmul.f32 %v2839_v56, %v2835_v48  ;;  %2618 = vmatprep.subr.bf16.mxu0 %v2968_v3 }
 0x386   : > { %v1073_v61 = vpop.permute.xlu1 %1072 }
 0x387   : > { %v902_v58 = vpack.c.bf16 %v900_v57, %v900_v57  ;;  %v1078_v63 = vsel %vm784_vm4, %v1073_v61, 0 }
 0x389   : > { %2603 = vmatmul.mubr.msk.bf16.vlgmr.msra.gmra.mxu1 %vm784_vm4, %v902_v58 }
 0x38a   : > { %2614 = vmatprep.mubr.msk.bf16.mxu1 %vm2969_vm1, %v2968_v3  ;;  %2613 = vmatpush3.bf16.msra.mxu1 %v1009_v2  ;;  %v1125_v8 = vpop.permute.xlu1 %1124 }
 0x38b   : > { %2624 = vmatprep.subr.bf16.mxu1 %v2968_v3  ;;  %v1130_v12 = vsel %vm784_vm4, %v1125_v8, 0 }
 0x38c   : > { %v2841_v59 = vpop.eup %2840 }
 0x38d   : > { %v901_v60 = vmul.f32 %v2841_v59, %v2837_v50 }
 0x38e   : > { %v1122_v19 = vpop.permute.xlu1 %1121 }
 0x38f   : > { %v903_v62 = vpack.c.bf16 %v901_v60, %v901_v60 }
 0x391   : > { %2609 = vmatmul.mubr.msk.bf16.vlgmr.msra.gmra.mxu0 %vm784_vm4, %v903_v62 }
 0x392   : > { %2619 = vmatpush3.bf16.xpose.msra.mxu0 %v1078_v63  ;;  %2620 = vmatprep.mubr.msk.bf16.mxu0 %vm2969_vm1, %v2968_v3 }
 0x393   : > { %2630 = vmatprep.subr.bf16.mxu0 %v2968_v3 }
 0x399   : > { %2621 = vmatmul.mubr.msk.bf16.vlgmr.msra.gmra.mxu0 %vm784_vm4, %v1070_v0 }
 0x39a   : > { %2632 = vmatprep.mubr.msk.bf16.mxu0 %vm2969_vm1, %v2968_v3 }
 0x449   : > { %v947_v4 = vpop.f32.mrf.mxu1 }
 0x44b   : > { %v2604_v5 = vpop.f32.mrf.mxu1 }
 0x44d   : > { %v950_v6 = vpop.f32.mrf.mxu1 }
 0x44f   : > { %v2605_v7 = vpop.f32.mrf.mxu1 }
 0x451   : > { %v995_v9 = vpop.f32.mrf.mxu0 }
 0x452   : > { %v1003_v10 = vpack.c.bf16 %v995_v9, %v947_v4  ;;  %v1295_v4 = vld [vmem:[%s3150_s1 + $0x4] sm:$0xf] }
 0x453   : > { %v2610_v11 = vpop.f32.mrf.mxu0  ;;  %v1300_v5 = vsel %vm909_vm5, %v1295_v4, 0 }
 0x454   : > { %2615 = vmatmul.mubr.msk.bf16.vlgmr.msra.gmra.mxu1 %vm784_vm4, %v1003_v10 }
 0x455   : > { %2625 = vmatpush3.bf16.xpose.msra.mxu1 %v1130_v12  ;;  %v998_v13 = vpop.f32.mrf.mxu0  ;;  %2626 = vmatprep.mubr.msk.bf16.mxu1 %vm2969_vm1, %v2968_v3 }
 0x456   : > { %2636 = vmatprep.subr.bf16.mxu1 %v2968_v3 }
 0x457   : > { %v2611_v14 = vpop.f32.mrf.mxu0 }
 0x459   : > { %v1114_v15 = vpop.f32.mrf.mxu0 }
 0x45a   : > { %v1115_v17 = vadd.f32 %v1114_v15, %v3235_v27 }
 0x45b   : > { %v2622_v20 = vpop.f32.mrf.mxu0 }
 0x45c   : > { %2627 = vmatmul.mubr.msk.bf16.vlgmr.msra.gmra.mxu1 %vm784_vm4, %v1122_v19  ;;  %v1172_v21 = vsel %vm784_vm4, %v1115_v17, -inf }
 0x45d   : > { %1173 = vmax.xlane.f32.xlu1 %v1172_v21  ;;  %v1117_v22 = vpop.f32.mrf.mxu0  ;;  %2638 = vmatprep.mubr.msk.bf16.mxu1 %vm2969_vm1, %v2968_v3 }
 0x45f   : > { %v2623_v24 = vpop.f32.mrf.mxu0 }
 0x4e6   : > { %v1174_v28 = vpop.xlane.xlu1 %1173 }
 0x4e7   : > { %v1178_v29 = vsub.f32 %v1115_v17, %v1174_v28 }
 0x4e9   : > { %v1180_v30 = vmul.f32 1.442695, %v1178_v29 }
 0x4eb   : > { %2842 = vpow2.f32 %v1180_v30 }
 0x4f8   : > { %v2843_v31 = vpop.eup %2842 }
 0x4f9   : > { %v1184_v32 = vsel %vm784_vm4, %v2843_v31, 0.0 }
 0x4fa   : > { %1185 = vadd.xlane.f32.xlu1 %v1184_v32 }
 0x514   : > { %v1045_v34 = vpop.f32.mrf.mxu1 }
 0x515   : > { %v1052_v35 = vadd.f32 %v1045_v34, %v1001_v33 }
 0x516   : > { %v2616_v36 = vpop.f32.mrf.mxu1 }
 0x517   : > { %1054 = vst.msk [vmem:[#allocation4] sm:$0xff] %vm710_vm2, %v1052_v35 }
 0x518   : > { %v1048_v38 = vpop.f32.mrf.mxu1 }
 0x519   : > { %v1053_v39 = vadd.f32 %v1048_v38, %v1002_v37 }
 0x51a   : > { %v2617_v40 = vpop.f32.mrf.mxu1 }
 0x51b   : > { %1055 = vst.msk [vmem:[#allocation4 + $0x8] sm:$0xff] %vm710_vm2, %v1053_v39 }
 0x51c   : > { %v1166_v41 = vpop.f32.mrf.mxu1 }
 0x51d   : > { %v1167_v42 = vadd.f32 %v1166_v41, %v3235_v27 }
 0x51e   : > { %v2628_v43 = vpop.f32.mrf.mxu1  ;;  %v1292_v34 = vld [vmem:[#allocation4] sm:$0xff] }
 0x51f   : > { %v1175_v44 = vsel %vm784_vm4, %v1167_v42, -inf }
 0x520   : > { %1176 = vmax.xlane.f32.xlu0 %v1175_v44  ;;  %v1169_v45 = vpop.f32.mrf.mxu1 }
 0x522   : > { %v2629_v46 = vpop.f32.mrf.mxu1  ;;  %v1293_v38 = vld [vmem:[#allocation4 + $0x8] sm:$0xff] }
 0x536   : > { %1244 = vrot.lane.b32.xlu0 %v3213_v18, %s2974_s17 }
 0x53a   : > { %1360 = vrot.lane.b32.xlu0 %v3218_v23, %s2975_s4 }
 0x583   : > { %v1186_v54 = vpop.xlane.xlu1 %1185 }
 0x5a9   : > { %v1177_v47 = vpop.xlane.xlu0 %1176 }
 0x5aa   : > { %v1179_v48 = vsub.f32 %v1167_v42, %v1177_v47 }
 0x5ac   : > { %v1182_v49 = vmul.f32 1.442695, %v1179_v48 }
 0x5ad   : > { %v1245_v50 = vpop.permute.xlu0 %1244 }
 0x5ae   : > { %2844 = vpow2.f32 %v1182_v49  ;;  %v1250_v51 = vsel %vm909_vm5, %v1245_v50, 0 }
 0x5af   : > { %2637 = vmatpush3.bf16.msra.mxu1 %v1250_v51  ;;  %2846 = vrcp.f32 %v1186_v54 }
 0x5b0   : > { %2648 = vmatprep.subr.bf16.mxu1 %v2968_v3 }
 0x5b1   : > { %v1361_v2 = vpop.permute.xlu0 %1360 }
 0x5bb   : > { %v2845_v52 = vpop.eup %2844 }
 0x5bc   : > { %v1187_v53 = vsel %vm784_vm4, %v2845_v52, 0.0  ;;  %v2847_v55 = vpop.eup %2846 }
 0x5bd   : > { %1188 = vadd.xlane.f32.xlu1 %v1187_v53  ;;  %v1192_v57 = vmul.f32 %v2847_v55, %v2843_v31 }
 0x5bf   : > { %v1194_v60 = vpack.c.bf16 %v1192_v57, %v1192_v57 }
 0x5ce   : > { %1196 = vrot.lane.b32.xlu1 %v3210_v16, %s2974_s17 }
 0x5d2   : > { %1363 = vrot.lane.b32.xlu1 %v3210_v16, %s2976_s29 }
 0x5d6   : > { %1415 = vrot.lane.b32.xlu1 %v3213_v18, %s2976_s29 }
 0x5da   : > { %1412 = vrot.lane.b32.xlu1 %v3226_v26, %s2975_s4 }
 0x646   : > { %v1189_v56 = vpop.xlane.xlu1 %1188 }
 0x647   : > { %2848 = vrcp.f32 %v1189_v56 }
 0x64a   : > { %v1197_v58 = vpop.permute.xlu1 %1196 }
 0x64b   : > { %v1202_v59 = vsel %vm909_vm5, %v1197_v58, 0  ;;  %v1586_v58 = vld [vmem:[%s3150_s1 + $0x8] sm:$0xf] }
 0x64c   : > { %2631 = vmatpush3.bf16.msra.mxu0 %v1202_v59  ;;  %v1591_v59 = vsel %vm909_vm5, %v1586_v58, 0 }
 0x64d   : > { %2642 = vmatprep.subr.bf16.mxu0 %v2968_v3 }
 0x64e   : > { %v1364_v63 = vpop.permute.xlu1 %1363 }
 0x64f   : > { %2633 = vmatmul.mubr.msk.bf16.vlgmr.msra.gmra.mxu0 %vm784_vm4, %v1194_v60  ;;  %v1369_v1 = vsel %vm784_vm4, %v1364_v63, 0 }
 0x650   : > { %2644 = vmatprep.mubr.msk.bf16.mxu0 %vm2969_vm1, %v2968_v3  ;;  %2643 = vmatpush3.bf16.msra.mxu0 %v1300_v5 }
 0x651   : > { %2654 = vmatprep.subr.bf16.mxu0 %v2968_v3 }
 0x652   : > { %v1416_v10 = vpop.permute.xlu1 %1415 }
 0x653   : > { %v1421_v14 = vsel %vm784_vm4, %v1416_v10, 0 }
 0x654   : > { %v2849_v61 = vpop.eup %2848 }
 0x655   : > { %v1193_v62 = vmul.f32 %v2849_v61, %v2845_v52 }
 0x656   : > { %v1413_v21 = vpop.permute.xlu1 %1412 }
 0x657   : > { %v1195_v0 = vpack.c.bf16 %v1193_v62, %v1193_v62 }
 0x659   : > { %2639 = vmatmul.mubr.msk.bf16.vlgmr.msra.gmra.mxu1 %vm784_vm4, %v1195_v0 }
 0x65a   : > { %2649 = vmatpush3.bf16.xpose.msra.mxu1 %v1369_v1  ;;  %2650 = vmatprep.mubr.msk.bf16.mxu1 %vm2969_vm1, %v2968_v3 }
 0x65b   : > { %2660 = vmatprep.subr.bf16.mxu1 %v2968_v3 }
 0x661   : > { %2651 = vmatmul.mubr.msk.bf16.vlgmr.msra.gmra.mxu1 %vm784_vm4, %v1361_v2 }
 0x662   : > { %2662 = vmatprep.mubr.msk.bf16.mxu1 %vm2969_vm1, %v2968_v3 }
 0x70f   : > { %v1238_v6 = vpop.f32.mrf.mxu0 }
 0x711   : > { %v2634_v7 = vpop.f32.mrf.mxu0 }
 0x713   : > { %v1241_v8 = vpop.f32.mrf.mxu0 }
 0x715   : > { %v2635_v9 = vpop.f32.mrf.mxu0 }
 0x719   : > { %v1286_v11 = vpop.f32.mrf.mxu1 }
 0x71a   : > { %v1294_v12 = vpack.c.bf16 %v1286_v11, %v1238_v6 }
 0x71b   : > { %v2640_v13 = vpop.f32.mrf.mxu1 }
 0x71c   : > { %2645 = vmatmul.mubr.msk.bf16.vlgmr.msra.gmra.mxu0 %vm784_vm4, %v1294_v12 }
 0x71d   : > { %2655 = vmatpush3.bf16.xpose.msra.mxu0 %v1421_v14  ;;  %v1289_v15 = vpop.f32.mrf.mxu1  ;;  %2656 = vmatprep.mubr.msk.bf16.mxu0 %vm2969_vm1, %v2968_v3 }
 0x71e   : > { %2666 = vmatprep.subr.bf16.mxu0 %v2968_v3 }
 0x71f   : > { %v2641_v17 = vpop.f32.mrf.mxu1 }
 0x721   : > { %v1405_v19 = vpop.f32.mrf.mxu1 }
 0x722   : > { %v1406_v20 = vadd.f32 %v1405_v19, %v3235_v27 }
 0x723   : > { %v2652_v22 = vpop.f32.mrf.mxu1 }
 0x724   : > { %2657 = vmatmul.mubr.msk.bf16.vlgmr.msra.gmra.mxu0 %vm784_vm4, %v1413_v21  ;;  %v1463_v24 = vsel %vm784_vm4, %v1406_v20, -inf }
 0x725   : > { %1464 = vmax.xlane.f32.xlu0 %v1463_v24  ;;  %v1408_v25 = vpop.f32.mrf.mxu1  ;;  %2668 = vmatprep.mubr.msk.bf16.mxu0 %vm2969_vm1, %v2968_v3 }
 0x727   : > { %v2653_v28 = vpop.f32.mrf.mxu1 }
 0x7ae   : > { %v1465_v29 = vpop.xlane.xlu0 %1464 }
 0x7af   : > { %v1469_v30 = vsub.f32 %v1406_v20, %v1465_v29 }
 0x7b1   : > { %v1471_v31 = vmul.f32 1.442695, %v1469_v30 }
 0x7b3   : > { %2850 = vpow2.f32 %v1471_v31 }
 0x7c0   : > { %v2851_v32 = vpop.eup %2850 }
 0x7c1   : > { %v1475_v33 = vsel %vm784_vm4, %v2851_v32, 0.0 }
 0x7c2   : > { %1476 = vadd.xlane.f32.xlu0 %v1475_v33 }
 0x7dc   : > { %v1336_v35 = vpop.f32.mrf.mxu0 }
 0x7dd   : > { %v1343_v36 = vadd.f32 %v1336_v35, %v1292_v34 }
 0x7de   : > { %v2646_v37 = vpop.f32.mrf.mxu0 }
 0x7df   : > { %1345 = vst.msk [vmem:[#allocation4] sm:$0xff] %vm710_vm2, %v1343_v36 }
 0x7e0   : > { %v1339_v39 = vpop.f32.mrf.mxu0 }
 0x7e1   : > { %v1344_v40 = vadd.f32 %v1339_v39, %v1293_v38 }
 0x7e2   : > { %v2647_v41 = vpop.f32.mrf.mxu0 }
 0x7e3   : > { %1346 = vst.msk [vmem:[#allocation4 + $0x8] sm:$0xff] %vm710_vm2, %v1344_v40 }
 0x7e4   : > { %v1457_v42 = vpop.f32.mrf.mxu0 }
 0x7e5   : > { %v1458_v43 = vadd.f32 %v1457_v42, %v3235_v27 }
 0x7e6   : > { %v2658_v44 = vpop.f32.mrf.mxu0  ;;  %v1583_v33 = vld [vmem:[#allocation4] sm:$0xff] }
 0x7e7   : > { %v1466_v45 = vsel %vm784_vm4, %v1458_v43, -inf }
 0x7e8   : > { %1467 = vmax.xlane.f32.xlu1 %v1466_v45  ;;  %v1460_v46 = vpop.f32.mrf.mxu0 }
 0x7ea   : > { %v2659_v47 = vpop.f32.mrf.mxu0  ;;  %v1584_v37 = vld [vmem:[#allocation4 + $0x8] sm:$0xff] }
 0x7f9   : > { %1487 = vrot.lane.b32.xlu1 %v3210_v16, %s2977_s18 }
 0x7fd   : > { %1654 = vrot.lane.b32.xlu1 %v3210_v16, %s2978_s22 }
 0x801   : > { %1706 = vrot.lane.b32.xlu1 %v3213_v18, %s2978_s22 }
 0x805   : > { %1703 = vrot.lane.b32.xlu1 %v3226_v26, %s2979_s21 }
 0x84b   : > { %v1477_v48 = vpop.xlane.xlu0 %1476 }
 0x84c   : > { %2852 = vrcp.f32 %v1477_v48 }
 0x859   : > { %v2853_v49 = vpop.eup %2852 }
 0x85a   : > { %v1483_v53 = vmul.f32 %v2853_v49, %v2851_v32 }
 0x85c   : > { %v1485_v56 = vpack.c.bf16 %v1483_v53, %v1483_v53 }
 0x871   : > { %v1468_v50 = vpop.xlane.xlu1 %1467 }
 0x872   : > { %v1470_v51 = vsub.f32 %v1458_v43, %v1468_v50 }
 0x874   : > { %v1473_v52 = vmul.f32 1.442695, %v1470_v51 }
 0x875   : > { %v1488_v54 = vpop.permute.xlu1 %1487 }
 0x876   : > { %2854 = vpow2.f32 %v1473_v52  ;;  %v1493_v55 = vsel %vm909_vm5, %v1488_v54, 0 }
 0x877   : > { %2661 = vmatpush3.bf16.msra.mxu1 %v1493_v55 }
 0x878   : > { %2672 = vmatprep.subr.bf16.mxu1 %v2968_v3 }
 0x879   : > { %v1655_v1 = vpop.permute.xlu1 %1654 }
 0x87a   : > { %2663 = vmatmul.mubr.msk.bf16.vlgmr.msra.gmra.mxu1 %vm784_vm4, %v1485_v56  ;;  %v1877_v56 = vld [vmem:[%s3150_s1 + $0xc] sm:$0xf] }
 0x87b   : > { %2674 = vmatprep.mubr.msk.bf16.mxu1 %vm2969_vm1, %v2968_v3  ;;  %2673 = vmatpush3.bf16.msra.mxu1 %v1591_v59 }
 0x87c   : > { %2684 = vmatprep.subr.bf16.mxu1 %v2968_v3 }
 0x87d   : > { %v1707_v9 = vpop.permute.xlu1 %1706 }
 0x87e   : > { %v1712_v13 = vsel %vm784_vm4, %v1707_v9, 0 }
 0x881   : > { %v1704_v20 = vpop.permute.xlu1 %1703 }
 0x883   : > { %v2855_v26 = vpop.eup %2854 }
 0x884   : > { %v1478_v57 = vsel %vm784_vm4, %v2855_v26, 0.0 }
 0x885   : > { %1479 = vadd.xlane.f32.xlu0 %v1478_v57 }
 0x89b   : > { %1535 = vrot.lane.b32.xlu0 %v3213_v18, %s2977_s18  ;;  %s3581_s18 = sld [smem:[#allocation11_spill]] }
 0x89f   : > { %1651 = vrot.lane.b32.xlu0 %v3218_v23, %s2979_s21  ;;  %v1660_v23 = vsel %vm784_vm4, %v1655_v1, 0 }
 0x8a1   : > { %p2497_p1 = scmp.ge.s32.totalorder %s3581_s18, 1 }
 0x90e   : > { %v1480_v60 = vpop.xlane.xlu0 %1479 }
 0x90f   : > { %2856 = vrcp.f32 %v1480_v60 }
 0x912   : > { %v1536_v61 = vpop.permute.xlu0 %1535 }
 0x913   : > { %v1541_v62 = vsel %vm909_vm5, %v1536_v61, 0 }
 0x914   : > { %2667 = vmatpush3.bf16.msra.mxu0 %v1541_v62 }
 0x915   : > { %2678 = vmatprep.subr.bf16.mxu0 %v2968_v3 }
 0x916   : > { %v1652_v4 = vpop.permute.xlu0 %1651 }
 0x91c   : > { %v2857_v63 = vpop.eup %2856 }
 0x91d   : > { %v1484_v0 = vmul.f32 %v2857_v63, %v2855_v26  ;;  %v1882_v26 = vsel %vm909_vm5, %v1877_v56, 0  ;;  %v2831_v56 = vld [vmem:[%s3181_s28 + $0x10] sm:$0xff]  }
 0x91f   : > { %v1486_v2 = vpack.c.bf16 %v1484_v0, %v1484_v0 }
 0x921   : > { %2669 = vmatmul.mubr.msk.bf16.vlgmr.msra.gmra.mxu0 %vm784_vm4, %v1486_v2 }
 0x922   : > { %2679 = vmatpush3.bf16.xpose.msra.mxu0 %v1660_v23  ;;  %2680 = vmatprep.mubr.msk.bf16.mxu0 %vm2969_vm1, %v2968_v3 }
 0x923   : > { %2690 = vmatprep.subr.bf16.mxu0 %v2968_v3 }
 0x929   : > { %2681 = vmatmul.mubr.msk.bf16.vlgmr.msra.gmra.mxu0 %vm784_vm4, %v1652_v4 }
 0x92a   : > { %2692 = vmatprep.mubr.msk.bf16.mxu0 %vm2969_vm1, %v2968_v3 }
 0x93a   : > { %v1529_v5 = vpop.f32.mrf.mxu1 }
 0x93c   : > { %v2664_v6 = vpop.f32.mrf.mxu1 }
 0x93e   : > { %v1532_v7 = vpop.f32.mrf.mxu1 }
 0x940   : > { %v2665_v8 = vpop.f32.mrf.mxu1 }
 0x9e1   : > { %v1577_v10 = vpop.f32.mrf.mxu0 }
 0x9e2   : > { %v1585_v11 = vpack.c.bf16 %v1577_v10, %v1529_v5 }
 0x9e3   : > { %v2670_v12 = vpop.f32.mrf.mxu0 }
 0x9e4   : > { %2675 = vmatmul.mubr.msk.bf16.vlgmr.msra.gmra.mxu1 %vm784_vm4, %v1585_v11 }
 0x9e5   : > { %2685 = vmatpush3.bf16.xpose.msra.mxu1 %v1712_v13  ;;  %v1580_v14 = vpop.f32.mrf.mxu0  ;;  %2686 = vmatprep.mubr.msk.bf16.mxu1 %vm2969_vm1, %v2968_v3 }
 0x9e6   : > { %2696 = vmatprep.subr.bf16.mxu1 %v2968_v3 }
 0x9e7   : > { %v2671_v15 = vpop.f32.mrf.mxu0 }
 0x9e9   : > { %v1696_v17 = vpop.f32.mrf.mxu0 }
 0x9ea   : > { %v1697_v19 = vadd.f32 %v1696_v17, %v3235_v27 }
 0x9eb   : > { %v2682_v21 = vpop.f32.mrf.mxu0 }
 0x9ec   : > { %2687 = vmatmul.mubr.msk.bf16.vlgmr.msra.gmra.mxu1 %vm784_vm4, %v1704_v20  ;;  %v1754_v22 = vsel %vm784_vm4, %v1697_v19, -inf }
 0x9ed   : > { %1755 = vmax.xlane.f32.xlu0 %v1754_v22  ;;  %v1699_v24 = vpop.f32.mrf.mxu0  ;;  %2698 = vmatprep.mubr.msk.bf16.mxu1 %vm2969_vm1, %v2968_v3 }
 0x9ef   : > { %v2683_v25 = vpop.f32.mrf.mxu0 }
 0xa76   : > { %v1756_v28 = vpop.xlane.xlu0 %1755 }
 0xa77   : > { %v1760_v29 = vsub.f32 %v1697_v19, %v1756_v28 }
 0xa79   : > { %v1762_v30 = vmul.f32 1.442695, %v1760_v29 }
 0xa7b   : > { %2858 = vpow2.f32 %v1762_v30 }
 0xa88   : > { %v2859_v31 = vpop.eup %2858 }
 0xa89   : > { %v1766_v32 = vsel %vm784_vm4, %v2859_v31, 0.0 }
 0xa8a   : > { %1767 = vadd.xlane.f32.xlu0 %v1766_v32 }
 0xaa4   : > { %v1627_v34 = vpop.f32.mrf.mxu1 }
 0xaa5   : > { %v1634_v35 = vadd.f32 %v1627_v34, %v1583_v33  ;;  %v2824_v34 = vld [vmem:[%s3167_s20 + $0x8] sm:$0xff]  }
 0xaa6   : > { %v2676_v36 = vpop.f32.mrf.mxu1 }
 0xaa7   : > { %1636 = vst.msk [vmem:[#allocation4] sm:$0xff] %vm710_vm2, %v1634_v35  ;;  %v2825_v35 = vld [vmem:[%s3167_s20] sm:$0xff]   ;;  %v2826_v36 = vld [vmem:[%s3181_s28 + $0x38] sm:$0xff]  }
 0xaa8   : > { %v1630_v38 = vpop.f32.mrf.mxu1 }
 0xaa9   : > { %v1635_v39 = vadd.f32 %v1630_v38, %v1584_v37  ;;  %v2827_v37 = vld [vmem:[%s3181_s28 + $0x30] sm:$0xff]   ;;  %v2828_v38 = vld [vmem:[%s3181_s28 + $0x28] sm:$0xff]  }
 0xaaa   : > { %v2677_v40 = vpop.f32.mrf.mxu1 }
 0xaab   : > { %1637 = vst.msk [vmem:[#allocation4 + $0x8] sm:$0xff] %vm710_vm2, %v1635_v39  ;;  %v2829_v39 = vld [vmem:[%s3181_s28 + $0x20] sm:$0xff]   ;;  %v2830_v40 = vld [vmem:[%s3181_s28 + $0x18] sm:$0xff]  }
 0xaac   : > { %v1748_v41 = vpop.f32.mrf.mxu1 }
 0xaad   : > { %v1749_v42 = vadd.f32 %v1748_v41, %v3235_v27 }
 0xaae   : > { %v2688_v43 = vpop.f32.mrf.mxu1  ;;  %v1874_v7 = vld [vmem:[#allocation4] sm:$0xff] }
 0xaaf   : > { %v1757_v44 = vsel %vm784_vm4, %v1749_v42, -inf }
 0xab0   : > { %1758 = vmax.xlane.f32.xlu1 %v1757_v44  ;;  %v1751_v45 = vpop.f32.mrf.mxu1 }
 0xab2   : > { %v2689_v46 = vpop.f32.mrf.mxu1  ;;  %v1875_v11 = vld [vmem:[#allocation4 + $0x8] sm:$0xff] }
 0xac1   : > { %1778 = vrot.lane.b32.xlu1 %v3210_v16, %s2980_s16 }
 0xb13   : > { %v1768_v47 = vpop.xlane.xlu0 %1767 }
 0xb14   : > { %2860 = vrcp.f32 %v1768_v47 }
 0xb21   : > { %v2861_v48 = vpop.eup %2860 }
 0xb22   : > { %v1774_v52 = vmul.f32 %v2861_v48, %v2859_v31 }
 0xb24   : > { %v1776_v54 = vpack.c.bf16 %v1774_v52, %v1774_v52 }
 0xb39   : > { %v1759_v49 = vpop.xlane.xlu1 %1758 }
 0xb3a   : > { %v1761_v50 = vsub.f32 %v1749_v42, %v1759_v49  ;;  %v2480_v49 = vld [vmem:[%s3578_s23] ss:$0 sm:$0xff] }
 0xb3c   : > { %v1764_v51 = vmul.f32 1.442695, %v1761_v50 }
 0xb3d   : > { %v1779_v53 = vpop.permute.xlu1 %1778 }
 0xb3e   : > { %2862 = vpow2.f32 %v1764_v51  ;;  %v1784_v27 = vsel %vm909_vm5, %v1779_v53, 0  ;;  %v2481_v53 = vld [vmem:[%s3579_s0] ss:$0 sm:$0xff] }
 0xb3f   : > { %2691 = vmatpush3.bf16.msra.mxu0 %v1784_v27 }
 0xb40   : > { %2702 = vmatprep.subr.bf16.mxu0 %v2968_v3 }
 0xb42   : > { %2693 = vmatmul.mubr.msk.bf16.vlgmr.msra.gmra.mxu0 %vm784_vm4, %v1776_v54 }
 0xb43   : > { %2704 = vmatprep.mubr.msk.bf16.mxu0 %vm2969_vm1, %v2968_v3  ;;  %2703 = vmatpush3.bf16.msra.mxu0 %v1882_v26  ;;  %v2832_v26 = vld [vmem:[%s3181_s28 + $0x8] sm:$0xff]  }
 0xb44   : > { %2716 = vmatprep.subr.bf16.mxu0 %v2968_v3 }
 0xb4b   : > { %v2863_v16 = vpop.eup %2862 }
 0xb4c   : > { %v1769_v55 = vsel %vm784_vm4, %v2863_v16, 0.0 }
 0xb4d   : > { %1770 = vadd.xlane.f32.xlu0 %v1769_v55 }
 0xb63   : > { %1826 = vrot.lane.b32.xlu0 %v3213_v18, %s2980_s16 }
 0xbd6   : > { %v1771_v57 = vpop.xlane.xlu0 %1770 }
 0xbd7   : > { %2864 = vrcp.f32 %v1771_v57  ;;  %v2833_v57 = vld [vmem:[%s3181_s28] sm:$0xff]  }
 0xbda   : > { %v1827_v58 = vpop.permute.xlu0 %1826 }
 0xbdb   : > { %v1832_v59 = vsel %vm909_vm5, %v1827_v58, 0  ;;  %v2482_v58 = vld [vmem:[%s657_s25] ss:$0 sm:$0xff] }
 0xbdc   : > { %2697 = vmatpush3.bf16.msra.mxu1 %v1832_v59 }
 0xbdd   : > { %2708 = vmatprep.subr.bf16.mxu1 %v2968_v3 }
 0xbe4   : > { %v2865_v60 = vpop.eup %2864 }
 0xbe5   : > { %v1775_v61 = vmul.f32 %v2865_v60, %v2863_v16 }
 0xbe7   : > { %v1777_v62 = vpack.c.bf16 %v1775_v61, %v1775_v61 }
 0xbe9   : > { %2699 = vmatmul.mubr.msk.bf16.vlgmr.msra.gmra.mxu1 %vm784_vm4, %v1777_v62 }
 0xbea   : > { %2712 = vmatprep.mubr.msk.bf16.mxu1 %vm2969_vm1, %v2968_v3  ;;  %2709 = vmatpush3.bf16.msra.mxu1 %v2824_v34 }
 0xbeb   : > { %2710 = vmatprep.subr.bf16.mxu1 %v2968_v3 }
 0xbee   : > { %2711 = vmatpush3.bf16.msra.mxu1 %v2825_v35  ;;  %v2496_v35 = vld [vmem:[%s671_s8] ss:$0 sm:$0xff] }
 0xc02   : > { %v1820_v18 = vpop.f32.mrf.mxu0 }
 0xc04   : > { %v2694_v63 = vpop.f32.mrf.mxu0 }
 0xc06   : > { %v1823_v0 = vpop.f32.mrf.mxu0 }
 0xc08   : > { %v2695_v1 = vpop.f32.mrf.mxu0 }
 0xca9   : > { %v1868_v2 = vpop.f32.mrf.mxu1 }
 0xcaa   : > { %v1876_v23 = vpack.c.bf16 %v1868_v2, %v1820_v18 }
 0xcab   : > { %v2700_v4 = vpop.f32.mrf.mxu1 }
 0xcac   : > { %2705 = vmatmul.mubr.msk.bf16.vlgmr.msra.gmra.mxu0 %vm784_vm4, %v1876_v23 }
 0xcad   : > { %v1871_v5 = vpop.f32.mrf.mxu1  ;;  %2732 = vmatprep.mubr.msk.bf16.mxu0 %vm2969_vm1, %v2968_v3  ;;  %2717 = vmatpush3.bf16.msra.mxu0 %v2826_v36 }
 0xcae   : > { %2718 = vmatprep.subr.bf16.mxu0 %v2968_v3 }
 0xcaf   : > { %v2701_v6 = vpop.f32.mrf.mxu1 }
 0xcb1   : > { %2719 = vmatpush3.bf16.msra.mxu0 %v2827_v37 }
 0xcb2   : > { %2720 = vmatprep.subr.bf16.mxu0 %v2968_v3 }
 0xcb5   : > { %2721 = vmatpush3.bf16.msra.mxu0 %v2828_v38 }
 0xcb6   : > { %2722 = vmatprep.subr.bf16.mxu0 %v2968_v3 }
 0xcb9   : > { %2723 = vmatpush3.bf16.msra.mxu0 %v2829_v39 }
 0xcba   : > { %2724 = vmatprep.subr.bf16.mxu0 %v2968_v3 }
 0xcbd   : > { %2725 = vmatpush3.bf16.msra.mxu0 %v2830_v40 }
 0xcbe   : > { %2726 = vmatprep.subr.bf16.mxu0 %v2968_v3 }
 0xcc1   : > { %2727 = vmatpush3.bf16.msra.mxu0 %v2831_v56 }
 0xcc2   : > { %2728 = vmatprep.subr.bf16.mxu0 %v2968_v3 }
 0xcc5   : > { %2729 = vmatpush3.bf16.msra.mxu0 %v2832_v26 }
 0xcc6   : > { %2730 = vmatprep.subr.bf16.mxu0 %v2968_v3  ;;  %v2486_v3 = vld [vmem:[%s665_s13] ss:$0 sm:$0xff] }
 0xcc9   : > { %2731 = vmatpush3.bf16.msra.mxu0 %v2833_v57 }
 0xd6c   : > { %v1918_v8 = vpop.f32.mrf.mxu0 }
 0xd6d   : > { %v1925_v9 = vadd.f32 %v1918_v8, %v1874_v7 }
 0xd6e   : > { %v2706_v10 = vpop.f32.mrf.mxu0 }
 0xd6f   : > { %1927 = vst.msk [vmem:[#allocation4] sm:$0xff] %vm710_vm2, %v1925_v9 }
 0xd70   : > { %v1921_v12 = vpop.f32.mrf.mxu0 }
 0xd71   : > { %v1926_v13 = vadd.f32 %v1921_v12, %v1875_v11 }
 0xd72   : > { %v2707_v14 = vpop.f32.mrf.mxu0 }
 0xd73   : > { %1928 = vst.msk [vmem:[#allocation4 + $0x8] sm:$0xff] %vm710_vm2, %v1926_v13 }
 0xd76   : > { %v1929_v15 = vld [vmem:[#allocation4] sm:$0xff] }
 0xd77   : > { %v1931_v17 = vsel %vm710_vm2, %v1929_v15, 0.0 }
 0xd78   : > { %1932 = vadd.xlane.f32.xlu1 %v1931_v17 }
 0xd7a   : > { %v1930_v19 = vld [vmem:[#allocation4 + $0x8] sm:$0xff] }
 0xd7b   : > { %v1934_v20 = vsel %vm710_vm2, %v1930_v19, 0.0 }
 0xd7c   : > { %1935 = vadd.xlane.f32.xlu0 %v1934_v20 }
 0xe01   : > { %v1933_v21 = vpop.xlane.xlu1 %1932 }
 0xe02   : > { %v1938_v22 = vmul.f32 0.03125, %v1933_v21 }
 0xe04   : > { %v1940_v24 = vsub.f32 %v1929_v15, %v1938_v22 }
 0xe05   : > { %v1936_v25 = vpop.xlane.xlu0 %1935 }
 0xe06   : > { %v1939_v28 = vmul.f32 0.03125, %v1936_v25  ;;  %v1942_v29 = vmul.f32 %v1940_v24, %v1940_v24 }
 0xe08   : > { %v1941_v30 = vsub.f32 %v1930_v19, %v1939_v28  ;;  %v1944_v31 = vsel %vm710_vm2, %v1942_v29, 0.0 }
 0xe09   : > { %1945 = vadd.xlane.f32.xlu1 %v1944_v31 }
 0xe0a   : > { %v1943_v32 = vmul.f32 %v1941_v30, %v1941_v30 }
 0xe0c   : > { %v1947_v33 = vsel %vm710_vm2, %v1943_v32, 0.0 }
 0xe0d   : > { %1948 = vadd.xlane.f32.xlu0 %v1947_v33  ;;  %v2495_v33 = vld [vmem:[%s668_s2] ss:$0 sm:$0xff] }
 0xe92   : > { %v1946_v41 = vpop.xlane.xlu1 %1945 }
 0xe93   : > { %v1950_v42 = vmul.f32 0.03125, %v1946_v41 }
 0xe95   : > { %v1952_v43 = vadd.f32 1e-05, %v1950_v42 }
 0xe96   : > { %v1949_v44 = vpop.xlane.xlu0 %1948 }
 0xe97   : > { %2866 = vrsqrt.f32 %v1952_v43  ;;  %v1951_v45 = vmul.f32 0.03125, %v1949_v44 }
 0xe99   : > { %v1953_v46 = vadd.f32 1e-05, %v1951_v45 }
 0xe9b   : > { %2868 = vrsqrt.f32 %v1953_v46 }
 0xea4   : > { %v2867_v47 = vpop.eup %2866 }
 0xea5   : > { %v1956_v48 = vmul.f32 %v2867_v47, %v1940_v24 }
 0xea7   : > { %v1965_v52 = vmul.f32 %v2480_v49, %v1956_v48 }
 0xea8   : > { %v2869_v50 = vpop.eup %2868 }
 0xea9   : > { %v1957_v51 = vmul.f32 %v2869_v50, %v1941_v30  ;;  %v1974_v54 = vadd.f32 %v2481_v53, %v1965_v52 }
 0xeab   : > { %v1966_v27 = vmul.f32 %v2480_v49, %v1957_v51 }
 0xead   : > { %v1975_v16 = vadd.f32 %v2481_v53, %v1966_v27 }
 0xeaf   : > { %v1976_v55 = vpack.c.bf16 %v1975_v16, %v1974_v54 }
 0xeb1   : > { %2713 = vmatmul.mubr.msk.bf16.vlgmr.msra.gmra.mxu1 %vm710_vm2, %v1976_v55 }
 0xf71   : > { %v2037_v59 = vpop.f32.mrf.mxu1 }
 0xf72   : > { %v2038_v61 = vadd.f32 %v2482_v58, %v2037_v59 }
 0xf73   : > { %v2714_v60 = vpop.f32.mrf.mxu1 }
 0xf74   : > { %v2044_v0 = vmax.f32 %v2038_v61, 0.0 }
 0xf75   : > { %v2040_v62 = vpop.f32.mrf.mxu1 }
 0xf76   : > { %v2041_v18 = vadd.f32 %v2482_v58, %v2040_v62 }
 0xf77   : > { %v2715_v63 = vpop.f32.mrf.mxu1 }
 0xf78   : > { %v2045_v1 = vmax.f32 %v2041_v18, 0.0 }
 0xf7a   : > { %v2046_v2 = vpack.c.bf16 %v2045_v1, %v2044_v0 }
 0xf7c   : > { %2733 = vmatmul.mubr.bf16.vlgmr.msra.gmra.mxu0 %v2046_v2 }
0x103c   : > { %v2152_v23 = vpop.f32.mrf.mxu0 }
0x103d   : > { %v2153_v4 = vadd.f32 %v2486_v3, %v2152_v23 }
0x103e   : > { %v2734_v5 = vpop.f32.mrf.mxu0 }
0x103f   : > { %v2159_v6 = vsel %vm710_vm2, %v2153_v4, 0.0 }
0x1040   : > { %2160 = vadd.xlane.f32.xlu1 %v2159_v6  ;;  %v2155_v7 = vpop.f32.mrf.mxu0 }
0x1041   : > { %v2156_v8 = vadd.f32 %v2486_v3, %v2155_v7 }
0x1042   : > { %v2735_v9 = vpop.f32.mrf.mxu0 }
0x1043   : > { %v2162_v10 = vsel %vm710_vm2, %v2156_v8, 0.0 }
0x1044   : > { %2163 = vadd.xlane.f32.xlu0 %v2162_v10 }
0x10c9   : > { %v2161_v11 = vpop.xlane.xlu1 %2160 }
0x10ca   : > { %v2165_v12 = vmul.f32 0.03125, %v2161_v11 }
0x10cc   : > { %v2167_v13 = vsub.f32 %v2153_v4, %v2165_v12 }
0x10cd   : > { %v2164_v14 = vpop.xlane.xlu0 %2163 }
0x10ce   : > { %v2166_v15 = vmul.f32 0.03125, %v2164_v14  ;;  %v2169_v17 = vmul.f32 %v2167_v13, %v2167_v13 }
0x10d0   : > { %v2168_v19 = vsub.f32 %v2156_v8, %v2166_v15  ;;  %v2171_v20 = vsel %vm710_vm2, %v2169_v17, 0.0 }
0x10d1   : > { %2172 = vadd.xlane.f32.xlu1 %v2171_v20 }
0x10d2   : > { %v2170_v21 = vmul.f32 %v2168_v19, %v2168_v19 }
0x10d4   : > { %v2174_v22 = vsel %vm710_vm2, %v2170_v21, 0.0 }
0x10d5   : > { %2175 = vadd.xlane.f32.xlu0 %v2174_v22 }
0x115a   : > { %v2173_v24 = vpop.xlane.xlu1 %2172 }
0x115b   : > { %v2177_v25 = vmul.f32 0.03125, %v2173_v24 }
0x115d   : > { %v2179_v28 = vadd.f32 1e-05, %v2177_v25 }
0x115e   : > { %v2176_v29 = vpop.xlane.xlu0 %2175 }
0x115f   : > { %2870 = vrsqrt.f32 %v2179_v28  ;;  %v2178_v30 = vmul.f32 0.03125, %v2176_v29 }
0x1161   : > { %v2180_v31 = vadd.f32 1e-05, %v2178_v30 }
0x1163   : > { %2872 = vrsqrt.f32 %v2180_v31 }
0x116c   : > { %v2871_v32 = vpop.eup %2870 }
0x116d   : > { %v2183_v34 = vmul.f32 %v2871_v32, %v2167_v13 }
0x116f   : > { %v2192_v36 = vmul.f32 %v2495_v33, %v2183_v34 }
0x1170   : > { %v2873_v37 = vpop.eup %2872 }
0x1171   : > { %v2201_v38 = vadd.f32 %v2496_v35, %v2192_v36  ;;  %v2184_v39 = vmul.f32 %v2873_v37, %v2168_v19  ;;  %2206 = sbr.rel (%p2497_p1) target bundleno = 4472 (0x1178), region = 84 }
0x1173   : > { %v2193_v40 = vmul.f32 %v2495_v33, %v2184_v39 }
0x1175   : > { %v2202_v41 = vadd.f32 %v2496_v35, %v2193_v40 }
0x1176   : > { %2207 = vst.msk [vmem:[#allocation2] sm:$0xff] %vm710_vm2, %v2201_v38 }
0x1177   : > { %2208 = vst.msk [vmem:[#allocation2 + $0x8] sm:$0xff] %vm710_vm2, %v2202_v41 }
0x1178 PF: > { %s3582_s2 = sld [smem:[#allocation11_spill]] }
0x117e   : > { %p2498_p2 = scmp.ne.s32.totalorder %s3582_s2, 1 }
0x1180   : > { %2212 = sbr.rel (%p2498_p2) target bundleno = 4486 (0x1186), region = 88 }
0x1185   : > { %2213 = vst.msk [vmem:[%s3191_s30] sm:$0xff] %vm710_vm2, %v2201_v38  ;;  %2214 = vst.msk [vmem:[%s3191_s30 + $0x8] sm:$0xff] %vm710_vm2, %v2202_v41 }
0x1186 PF: > { %s3583_s8 = sld [smem:[#allocation12_spill]]  ;;  %s2229_s27 = sshll.u32 %s3191_s30, 4  ;;  %s3462_s27 = int_to_ptr.vmem [resolvable:$true] %s2229_s27 }
0x1187   : > { %s3584_s26 = sld [smem:[#allocation9_spill]]  ;;  %s2874_s19 = scalar_lea.vmem %s3462_s27, 256 }
0x1188   : > { %s3586_s20 = sld [smem:[#allocation27_spill]]  ;;  %p2875_p4 = scmp.ne.s32.totalorder %s3462_s27, %s2874_s19 }
0x1189   : > { %s2981_s14 = smov [#allocation5]  }
0x118a   : > { %p2876_p5 = pnand %p2875_p4, %p3108_p3  ;;  %s2878_s17 = sshll.u32 %s2981_s14, 4  ;;  %s2879_s17 = int_to_ptr.vmem [resolvable:$false] %s2878_s17 }
0x118b   : > { %s2880_s13 = scalar_lea.vmem %s2879_s17, 512  ;;  %p2881_p7 = scmp.lt.s32.totalorder %s3462_s27, %s2879_s17 }
0x118c   : > { %s2524_s21 = sshll.u32 %s3583_s8, 8  ;;  %p2877_p6 = pneg %p2876_p5 }
0x118d   : > { %s3588_s0 = sand.u32 1, %s3584_s26   ;;  %p2882_p8 = scmp.lt.s32.totalorder %s2880_s13, %s2874_s19 }
0x118e   : > { %s3587_s23 = smov %s3586_s20  ;;  %s3459_s24 = scalar_lea.hbm %s3586_s20, %s2524_s21 }
0x118f   : > { %s3466_s15 = scalar_lea.sflag [#allocation6], %s3588_s0  ;;  %p2883_p10 = por %p2882_p8, %p2881_p7 }
0x1191   : > { %p2884_p11 = pnand %p2883_p10, %p2877_p6 }
0x1193   : > { %2887 = shalt.err (!%p2884_p11)
}
0x1194   : > { %s2888_s30 = scalar_lea.hbm %s3459_s24, 256  ;;  %s2892_s4 = scalar_lea.hbm %s3587_s23, 512 }
0x1195   : > { %p2889_p12 = scmp.ne.s32.totalorder %s3459_s24, %s2888_s30  ;;  %p2893_p1 = scmp.lt.s32.totalorder %s3459_s24, %s3587_s23 }
0x1196   : > { %p2894_p2 = scmp.lt.s32.totalorder %s2892_s4, %s2888_s30 }
0x1197   : > { %p2890_p13 = pnand %p2889_p12, %p3108_p3 }
0x1198   : > { %p2895_p4 = por %p2894_p2, %p2893_p1 }
0x1199   : > { %p2891_p0 = pneg %p2890_p13 }
0x119b   : > { %p2896_p5 = pnand %p2895_p4, %p2891_p0 }
0x119d   : > { %2899 = shalt.err (!%p2896_p5)
}
0x119e   : > { %s2982_s2 = smov 128   ;;  %s2983_s8 = smov 8  }
0x119f   : > { %2736 = dma.vmem_to_hbm [thread:$0]  (%p3108_p3), %s3462_s27, 256, %s3459_s24, %s3466_s15, %s2982_s2, %s2982_s2, %s2983_s8  }
0x11a0 PF: > { %s3589_s26 = sld [smem:[#allocation15_spill]] }
0x11a1   : > { %s3590_s21 = sld [smem:[#allocation8_spill]] }
0x11a6   : > { %p2742_p6 = scmp.ge.s32.totalorder %s3589_s26, 2 }
0x11a7   : > { %s2244_s1 = sand.u32 1, %s3590_s21  }
0x11a8   : > { %p2739_p7 = pnand %p2742_p6, %p3118_p9  ;;  %s2245_s20 = scalar_lea.sflag [#allocation6], %s2244_s1 }
0x11aa   : > { %p2740_p8 = pneg %p2739_p7 }
0x11ac   : > { %2933 = dma.done.wait (%p2740_p8), %s2245_s20, 256  }
0x11ad   : > { %2935 = vsyncadd (%p2740_p8), %s2245_s20, 4294967040  ;;  %s27_s20 = sadd.s32 1, %s3589_s26   ;;  %s3592_s29 = sld [smem:[#allocation9_spill]] }
0x11ae   : > { %p24_p10 = scmp.ge.s32.totalorder %s27_s20, 6   ;;  %s3593_s30 = sld [smem:[#allocation10_spill]] }
0x11af   : > { %s3594_s15 = sld [smem:[#allocation20_spill]] }
0x11b0   : > { %s3595_s16 = sld [smem:[#allocation13_spill]]  ;;  %26 = sbr.rel (!%p24_p10) target bundleno = 13 (0xd), region = 159 }
0x11b1   : > { %s3596_s17 = sld [smem:[#allocation14_spill]] }
0x11b2   : > { %s3597_s18 = sld [smem:[#allocation16_spill]] }
0x11b3   : > { %s3598_s19 = sld [smem:[#allocation18_spill]] }
0x11b5   :  { %2250 = vsyncpa [#allocation6], 1 }
0x11b6   :  { %2252 = vsyncpa [#allocation6 + $0x1], 1 }

</bundles_post_ra>
